<compile_context>
chip_gen: v6e
topology: v6e:2x2x1
jax: 0.10.0
libtpu: 0.0.40
codegen_flags: <defaults>
</compile_context>

<pallas_src>
import functools

import jax
import jax.numpy as jnp
import numpy as np
from jax.experimental import pallas as pl
from jax.experimental.pallas import tpu as pltpu

# ----------------------------- model config ---------------------------------
SEQ_N_FEATURES = 13
EMB_ACQ_DIMS = [(5, 3), (7, 4)]            # per-loan categorical embeddings
EMB_SEQ_DIMS = [(13, 4), (32, 5), (8, 3)]  # per-timestep (ymd) embeddings
LSTM_SIZE = 32
LSTM_LAYERS = 2
BN_EPS = 1e-5

LSTM_INPUT_DIM = (SEQ_N_FEATURES
                  + sum(d for _, d in EMB_ACQ_DIMS)
                  + sum(d for _, d in EMB_SEQ_DIMS))   # = 32

LIN1 = 1 * LSTM_SIZE      # 32
LIN2 = 2 * LIN1           # 64
LIN3 = 1 * LSTM_SIZE      # 32
OUT_DIM = 19 * 12         # 228
OUT_PAD = ((OUT_DIM + 127) // 128) * 128   # 256, lane-dense output width

B, T = 4, 8               # batch, max sequence length (small test shapes)


# --------------------------- fused forward kernel ----------------------------
def _fused_kernel(x_ref, len_ref,
                  wih0_ref, whh0_ref, b0_ref,
                  wih1_ref, whh1_ref, b1_ref,
                  w1_ref, bb1_ref, w2_ref, bb2_ref,
                  w3_ref, bb3_ref, w4_ref, bb4_ref,
                  o_ref, *, seq_t, batch_p, hidden):
    Tn, Bp, H = seq_t, batch_p, hidden
    G = 4 * H
    f32 = jnp.float32

    lens = len_ref[...]                                     # (Bp, 1) int32

    # ---- hoisted constants (off the serial recurrence chain) ---------------
    # Per-lane gate-activation constants: sigmoid(x) = 0.5*tanh(0.5*x) + 0.5,
    # so one full-width tanh over the whole (Bp, 4H) gate vreg covers the
    # i/f/o sigmoid lanes and the g tanh lanes. Scale is 0.5 on sigmoid
    # lanes and 1.0 on the g block; same vector serves as pre- and post-scale.
    lane = jax.lax.broadcasted_iota(jnp.int32, (Bp, G), 1)
    is_g_lane = (lane >= 2 * H) & (lane < 3 * H)
    gate_scale = jnp.where(is_g_lane, 1.0, 0.5).astype(f32)    # (Bp, 4H)
    gate_bias = jnp.where(is_g_lane, 0.0, 0.5).astype(f32)     # (Bp, 4H)

    # Weights / biases read once (not per step).
    whh0 = whh0_ref[...]                                     # (H, 4H)
    wih1 = wih1_ref[...]                                     # (H, 4H)
    whh1 = whh1_ref[...]                                     # (H, 4H)
    b1b = jnp.broadcast_to(b1_ref[...], (Bp, G))             # (Bp, 4H)

    # Layer-0 input projection hoisted out of the recurrence:
    # one (T*Bp, D) x (D, 4H) MXU call + bias.
    gx0 = (jnp.dot(x_ref[...], wih0_ref[...], preferred_element_type=f32)
           + b0_ref[...])                                    # (T*Bp, 4H)

    def gate_step(g, h, c, m):
        """One LSTM cell update from pre-activation gates g: (Bp, 4H)."""
        # Single full-width EUP tanh for all four gates (PyTorch order i,f,g,o).
        act = jnp.tanh(g * gate_scale) * gate_scale + gate_bias
        i_g = act[:, 0 * H:1 * H]
        f_g = act[:, 1 * H:2 * H]
        g_g = act[:, 2 * H:3 * H]
        o_g = act[:, 3 * H:4 * H]
        c_new = f_g * c + i_g * g_g
        h_new = o_g * jnp.tanh(c_new)
        # pack_padded_sequence semantics: state frozen once t >= seq_len[b],
        # so the carried h equals ht[-1] of this layer at the end.
        return jnp.where(m, h_new, h), jnp.where(m, c_new, c)

    h0 = jnp.zeros((Bp, H), f32)
    c0 = jnp.zeros((Bp, H), f32)
    h1 = jnp.zeros((Bp, H), f32)
    c1 = jnp.zeros((Bp, H), f32)

    # Interleaved two-layer recurrence (static unrolled, T small): layer-1
    # step t consumes h0_t in-register, so the serial chain is ~T+1 cell
    # updates instead of 2T and there is no concat / relayout barrier.
    # TODO(synk): if per-step latency still dominates at larger T, hold W_hh
    # in MXU weight registers across steps via pltpu.matmul_push_rhs /
    # matmul_acc_lhs / matmul_pop instead of re-streaming it with jnp.dot.
    for t in range(Tn):
        m = jnp.broadcast_to(lens > t, (Bp, H))              # shared by layers
        g0 = gx0[t * Bp:(t + 1) * Bp, :] + jnp.dot(
            h0, whh0, preferred_element_type=f32)            # (Bp, 4H)
        h0, c0 = gate_step(g0, h0, c0, m)
        g1 = (jnp.dot(h0, wih1, preferred_element_type=f32)
              + jnp.dot(h1, whh1, preferred_element_type=f32) + b1b)
        h1, c1 = gate_step(g1, h1, c1, m)

    # MLP head. Eval-mode BatchNorm pre-folded into the following Linear
    # (numerically identical); dropout(0.4) is identity in eval mode; final
    # Linear zero-padded to a lane-dense 256-wide output.
    z = jnp.maximum(
        jnp.dot(h1, w1_ref[...], preferred_element_type=f32) + bb1_ref[...], 0.0)
    z = jnp.maximum(
        jnp.dot(z, w2_ref[...], preferred_element_type=f32) + bb2_ref[...], 0.0)
    z = jnp.maximum(
        jnp.dot(z, w3_ref[...], preferred_element_type=f32) + bb3_ref[...], 0.0)
    o_ref[...] = (jnp.dot(z, w4_ref[...], preferred_element_type=f32)
                  + bb4_ref[...])


def fused_forward_pallas(x_tbd, lens_b, lstm_params, mlp_folded):
    """x_tbd: (T, B, D) float32; lens_b: (B,) int32."""
    Tn, Bn, D = x_tbd.shape
    H = LSTM_SIZE
    Bp = ((Bn + 7) // 8) * 8            # pad batch to a multiple of 8 sublanes
    pad = Bp - Bn

    x_p = jnp.pad(x_tbd, ((0, 0), (0, pad), (0, 0)))
    x2d = x_p.reshape(Tn * Bp, D)       # row t*Bp+b == (t, b)
    lens_p = jnp.pad(lens_b.astype(jnp.int32), ((0, pad),)).reshape(Bp, 1)

    (wih0, whh0, b0), (wih1, whh1, b1) = lstm_params
    w1, bb1, w2f, bb2f, w3f, bb3f, w4f, bb4f = mlp_folded

    # Lane-dense output: zero-pad the last Linear's columns 228 -> 256 so the
    # output store is an unmasked vst; sliced back to OUT_DIM below.
    w4p = jnp.pad(w4f, ((0, 0), (0, OUT_PAD - OUT_DIM)))
    b4p = jnp.pad(bb4f, ((0, 0), (0, OUT_PAD - OUT_DIM)))

    args = [x2d, lens_p,
            wih0, whh0, b0,
            wih1, whh1, b1,
            w1, bb1, w2f, bb2f, w3f, bb3f, w4p, b4p]

    def full_spec(a):
        nd = a.ndim
        return pl.BlockSpec(a.shape, lambda i, nd=nd: (0,) * nd)

    kernel = functools.partial(_fused_kernel, seq_t=Tn, batch_p=Bp, hidden=H)
    out = pl.pallas_call(
        kernel,
        out_shape=jax.ShapeDtypeStruct((Bp, OUT_PAD), jnp.float32),
        grid=(1,),
        in_specs=[full_spec(a) for a in args],
        out_specs=pl.BlockSpec((Bp, OUT_PAD), lambda i: (0, 0)),
        compiler_params=pltpu.CompilerParams(
            dimension_semantics=("arbitrary",)),
        # TODO(synk): when batch grows beyond toy sizes, add a leading
        # "parallel" batch-tile grid axis (v7x has 2 TCs) and size tiles
        # against 64 MiB VMEM (v7x), not 128 MiB (v5e/v6e); cast matmul
        # operands to bf16 on v6e/v7x while keeping h/c state and gate
        # elementwise math in f32.
    )(*args)
    return out[:Bn, :OUT_DIM]


# --------------------------- parameter construction --------------------------
def init_params(key):
    params = {}
    ks = iter(jax.random.split(key, 64))

    def unif(shape, k):
        return jax.random.uniform(next(ks), shape, jnp.float32, -k, k)

    params["emb_acq"] = [jax.random.normal(next(ks), (c, d), jnp.float32) * 0.5
                         for c, d in EMB_ACQ_DIMS]
    params["emb_seq"] = [jax.random.normal(next(ks), (c, d), jnp.float32) * 0.5
                         for c, d in EMB_SEQ_DIMS]

    params["lstm"] = []
    kscale = 1.0 / np.sqrt(LSTM_SIZE)
    for layer in range(LSTM_LAYERS):
        din = LSTM_INPUT_DIM if layer == 0 else LSTM_SIZE
        w_ih = unif((din, 4 * LSTM_SIZE), kscale)          # transposed vs torch
        w_hh = unif((LSTM_SIZE, 4 * LSTM_SIZE), kscale)
        b = unif((1, 4 * LSTM_SIZE), kscale)               # b_ih + b_hh combined
        params["lstm"].append((w_ih, w_hh, b))

    def linear(din, dout):
        k = 1.0 / np.sqrt(din)
        return unif((din, dout), k), unif((1, dout), k)

    def bn(d):
        gamma = 1.0 + 0.1 * jax.random.normal(next(ks), (1, d), jnp.float32)
        beta = 0.1 * jax.random.normal(next(ks), (1, d), jnp.float32)
        mean = 0.1 * jax.random.normal(next(ks), (1, d), jnp.float32)
        var = 1.0 + 0.2 * jax.random.uniform(next(ks), (1, d), jnp.float32)
        return gamma, beta, mean, var

    w1, b1 = linear(LSTM_SIZE, LIN1)
    g1, bt1, m1, v1 = bn(LIN1)
    w2, b2 = linear(LIN1, LIN2)
    g2, bt2, m2, v2 = bn(LIN2)
    w3, b3 = linear(LIN2, LIN3)
    g3, bt3, m3, v3 = bn(LIN3)
    w4, b4 = linear(LIN3, OUT_DIM)
    params["mlp"] = (w1, b1, g1, bt1, m1, v1,
                     w2, b2, g2, bt2, m2, v2,
                     w3, b3, g3, bt3, m3, v3,
                     w4, b4)
    return params


def _fold_bn_into_next_linear(gamma, beta, mean, var, w_next, b_next):
    """Eval-mode BN is affine: bn(h) = h*s + t. Fold it into the next Linear."""
    s = gamma * jax.lax.rsqrt(var + BN_EPS)    # (1, d)
    t = beta - mean * s                        # (1, d)
    return s.reshape(-1, 1) * w_next, b_next + t @ w_next


def fold_mlp_params(mlp_params):
    (w1, b1, g1, bt1, m1, v1,
     w2, b2, g2, bt2, m2, v2,
     w3, b3, g3, bt3, m3, v3,
     w4, b4) = mlp_params
    w2f, b2f = _fold_bn_into_next_linear(g1, bt1, m1, v1, w2, b2)
    w3f, b3f = _fold_bn_into_next_linear(g2, bt2, m2, v2, w3, b3)
    w4f, b4f = _fold_bn_into_next_linear(g3, bt3, m3, v3, w4, b4)
    return (w1, b1, w2f, b2f, w3f, b3f, w4f, b4f)


# --------------------------------- forward -----------------------------------
def pit_m1_forward(params, seq, seq_len, ymd, acq):
    Bn, Tn, _ = seq.shape
    # embedding lookups + concat (data-dependent gather: plain JAX glue)
    ea = jnp.concatenate([params["emb_acq"][i][acq[:, i]]
                          for i in range(len(EMB_ACQ_DIMS))], axis=1)   # (B, 7)
    ea = jnp.broadcast_to(ea[:, None, :], (Bn, Tn, ea.shape[1]))
    ey = jnp.concatenate([params["emb_seq"][i][ymd[:, :, i]]
                          for i in range(len(EMB_SEQ_DIMS))], axis=2)   # (B, T, 12)
    s = jnp.concatenate([seq, ea, ey], axis=2)                          # (B, T, 32)

    x = jnp.transpose(s, (1, 0, 2)).astype(jnp.float32)                 # (T, B, 32)
    lens = seq_len.astype(jnp.int32)

    mlp_folded = fold_mlp_params(params["mlp"])
    out = fused_forward_pallas(x, lens, params["lstm"], mlp_folded)     # (B, 228)
    return out.reshape(-1, 19, 12)


# ----------------------------- pure-JAX reference ----------------------------
def ref_forward(params, seq, seq_len, ymd, acq):
    Bn, Tn, _ = seq.shape
    ea = jnp.concatenate([params["emb_acq"][i][acq[:, i]]
                          for i in range(len(EMB_ACQ_DIMS))], axis=1)
    ea = jnp.broadcast_to(ea[:, None, :], (Bn, Tn, ea.shape[1]))
    ey = jnp.concatenate([params["emb_seq"][i][ymd[:, :, i]]
                          for i in range(len(EMB_SEQ_DIMS))], axis=2)
    s = jnp.concatenate([seq, ea, ey], axis=2)
    x = jnp.transpose(s, (1, 0, 2)).astype(jnp.float32)
    lens = seq_len.astype(jnp.int32)
    H = LSTM_SIZE
    h_last = None
    for layer in range(LSTM_LAYERS):
        w_ih, w_hh, b = params["lstm"][layer]

        def step(carry, inp):
            h, c = carry
            xt, t = inp
            gates = xt @ w_ih + h @ w_hh + b
            i_g = jax.nn.sigmoid(gates[:, :H])
            f_g = jax.nn.sigmoid(gates[:, H:2 * H])
            g_g = jnp.tanh(gates[:, 2 * H:3 * H])
            o_g = jax.nn.sigmoid(gates[:, 3 * H:])
            c_new = f_g * c + i_g * g_g
            h_new = o_g * jnp.tanh(c_new)
            valid = (t < lens)[:, None]
            h = jnp.where(valid, h_new, h)
            c = jnp.where(valid, c_new, c)
            return (h, c), h

        (h_fin, _), ys = jax.lax.scan(
            step,
            (jnp.zeros((Bn, H), jnp.float32), jnp.zeros((Bn, H), jnp.float32)),
            (x, jnp.arange(Tn)))
        x = ys
        h_last = h_fin

    (w1, b1, g1, bt1, m1, v1,
     w2, b2, g2, bt2, m2, v2,
     w3, b3, g3, bt3, m3, v3,
     w4, b4) = params["mlp"]

    def lrb(x, w, b, g, bt, m, v):
        h = jnp.maximum(x @ w + b, 0.0)
        return (h - m) * (g * jax.lax.rsqrt(v + BN_EPS)) + bt

    out = lrb(h_last, w1, b1, g1, bt1, m1, v1)
    out = lrb(out, w2, b2, g2, bt2, m2, v2)
    out = lrb(out, w3, b3, g3, bt3, m3, v3)
    out = out @ w4 + b4
    return out.reshape(-1, 19, 12)


# ----------------------------------- main ------------------------------------
if __name__ == "__main__":
    key = jax.random.PRNGKey(0)
    k_par, k_seq, k_ymd, k_acq = jax.random.split(key, 4)

    params = init_params(k_par)

    seq = jax.random.normal(k_seq, (B, T, SEQ_N_FEATURES), jnp.float32)
    # pack_padded_sequence(enforce_sorted=True) -> lengths sorted descending
    seq_len = jnp.array([8, 7, 5, 3], dtype=jnp.int32)
    ymd_keys = jax.random.split(k_ymd, len(EMB_SEQ_DIMS))
    ymd = jnp.stack([jax.random.randint(ymd_keys[i], (B, T), 0, EMB_SEQ_DIMS[i][0])
                     for i in range(len(EMB_SEQ_DIMS))], axis=2).astype(jnp.int32)
    acq_keys = jax.random.split(k_acq, len(EMB_ACQ_DIMS))
    acq = jnp.stack([jax.random.randint(acq_keys[i], (B,), 0, EMB_ACQ_DIMS[i][0])
                     for i in range(len(EMB_ACQ_DIMS))], axis=1).astype(jnp.int32)

    out = pit_m1_forward(params, seq, seq_len, ymd, acq)
    out = jax.block_until_ready(out)
    assert out.shape == (B, 19, 12), out.shape

    ref = jax.block_until_ready(ref_forward(params, seq, seq_len, ymd, acq))
    np.testing.assert_allclose(np.asarray(out), np.asarray(ref),
                               rtol=1e-2, atol=1e-2)

    print("KERNEL_OK")
</pallas_src>

<mosaic_0001>
module attributes {stable_mosaic.version = 11 : i64} {
  func.func @_fused_kernel(%arg0: i32, %arg1: memref<64x32xf32, #tpu.memory_space<vmem>>, %arg2: memref<8x1xi32, #tpu.memory_space<vmem>>, %arg3: memref<32x128xf32, #tpu.memory_space<vmem>>, %arg4: memref<32x128xf32, #tpu.memory_space<vmem>>, %arg5: memref<1x128xf32, #tpu.memory_space<vmem>>, %arg6: memref<32x128xf32, #tpu.memory_space<vmem>>, %arg7: memref<32x128xf32, #tpu.memory_space<vmem>>, %arg8: memref<1x128xf32, #tpu.memory_space<vmem>>, %arg9: memref<32x32xf32, #tpu.memory_space<vmem>>, %arg10: memref<1x32xf32, #tpu.memory_space<vmem>>, %arg11: memref<32x64xf32, #tpu.memory_space<vmem>>, %arg12: memref<1x64xf32, #tpu.memory_space<vmem>>, %arg13: memref<64x32xf32, #tpu.memory_space<vmem>>, %arg14: memref<1x32xf32, #tpu.memory_space<vmem>>, %arg15: memref<32x256xf32, #tpu.memory_space<vmem>>, %arg16: memref<1x256xf32, #tpu.memory_space<vmem>>, %arg17: memref<8x256xf32, #tpu.memory_space<vmem>>) attributes {dimension_semantics = [#tpu.dimension_semantics<arbitrary>], iteration_bounds = array<i64: 1>, scalar_prefetch = 0 : i64, scratch_operands = 0 : i64, tpu.core_type = #tpu.core_type<tc>, window_params = [{pipeline_mode = #tpu.pipeline_mode<synchronous>, transform_indices = @transform_0, window_bounds = array<i64: 64, 32>}, {pipeline_mode = #tpu.pipeline_mode<synchronous>, transform_indices = @transform_1, window_bounds = array<i64: 8, 1>}, {pipeline_mode = #tpu.pipeline_mode<synchronous>, transform_indices = @transform_2, window_bounds = array<i64: 32, 128>}, {pipeline_mode = #tpu.pipeline_mode<synchronous>, transform_indices = @transform_3, window_bounds = array<i64: 32, 128>}, {pipeline_mode = #tpu.pipeline_mode<synchronous>, transform_indices = @transform_4, window_bounds = array<i64: 1, 128>}, {pipeline_mode = #tpu.pipeline_mode<synchronous>, transform_indices = @transform_5, window_bounds = array<i64: 32, 128>}, {pipeline_mode = #tpu.pipeline_mode<synchronous>, transform_indices = @transform_6, window_bounds = array<i64: 32, 128>}, {pipeline_mode = #tpu.pipeline_mode<synchronous>, transform_indices = @transform_7, window_bounds = array<i64: 1, 128>}, {pipeline_mode = #tpu.pipeline_mode<synchronous>, transform_indices = @transform_8, window_bounds = array<i64: 32, 32>}, {pipeline_mode = #tpu.pipeline_mode<synchronous>, transform_indices = @transform_9, window_bounds = array<i64: 1, 32>}, {pipeline_mode = #tpu.pipeline_mode<synchronous>, transform_indices = @transform_10, window_bounds = array<i64: 32, 64>}, {pipeline_mode = #tpu.pipeline_mode<synchronous>, transform_indices = @transform_11, window_bounds = array<i64: 1, 64>}, {pipeline_mode = #tpu.pipeline_mode<synchronous>, transform_indices = @transform_12, window_bounds = array<i64: 64, 32>}, {pipeline_mode = #tpu.pipeline_mode<synchronous>, transform_indices = @transform_13, window_bounds = array<i64: 1, 32>}, {pipeline_mode = #tpu.pipeline_mode<synchronous>, transform_indices = @transform_14, window_bounds = array<i64: 32, 256>}, {pipeline_mode = #tpu.pipeline_mode<synchronous>, transform_indices = @transform_15, window_bounds = array<i64: 1, 256>}, {pipeline_mode = #tpu.pipeline_mode<synchronous>, transform_indices = @transform_16, window_bounds = array<i64: 8, 256>}]} {
    %c0 = arith.constant 0 : index
    %c0_0 = arith.constant 0 : index
    %0 = vector.load %arg2[%c0, %c0_0] : memref<8x1xi32, #tpu.memory_space<vmem>>, vector<8x1xi32>
    %1 = tpu.iota {dimensions = array<i32: 1>} : vector<8x128xi32>
    %c64_i32 = arith.constant 64 : i32
    %2 = vector.broadcast %c64_i32 : i32 to vector<8x128xi32>
    %3 = arith.cmpi sge, %1, %2 : vector<8x128xi32>
    %c96_i32 = arith.constant 96 : i32
    %4 = vector.broadcast %c96_i32 : i32 to vector<8x128xi32>
    %5 = arith.cmpi slt, %1, %4 : vector<8x128xi32>
    %6 = arith.andi %3, %5 : vector<8x128xi1>
    %cst = arith.constant 1.000000e+00 : f32
    %cst_1 = arith.constant 5.000000e-01 : f32
    %7 = vector.broadcast %cst : f32 to vector<8x128xf32>
    %8 = vector.broadcast %cst_1 : f32 to vector<8x128xf32>
    %9 = arith.select %6, %7, %8 : vector<8x128xi1>, vector<8x128xf32>
    %cst_2 = arith.constant 0.000000e+00 : f32
    %cst_3 = arith.constant 5.000000e-01 : f32
    %10 = vector.broadcast %cst_2 : f32 to vector<8x128xf32>
    %11 = vector.broadcast %cst_3 : f32 to vector<8x128xf32>
    %12 = arith.select %6, %10, %11 : vector<8x128xi1>, vector<8x128xf32>
    %c0_4 = arith.constant 0 : index
    %c0_5 = arith.constant 0 : index
    %13 = vector.load %arg4[%c0_4, %c0_5] : memref<32x128xf32, #tpu.memory_space<vmem>>, vector<32x128xf32>
    %c0_6 = arith.constant 0 : index
    %c0_7 = arith.constant 0 : index
    %14 = vector.load %arg6[%c0_6, %c0_7] : memref<32x128xf32, #tpu.memory_space<vmem>>, vector<32x128xf32>
    %c0_8 = arith.constant 0 : index
    %c0_9 = arith.constant 0 : index
    %15 = vector.load %arg7[%c0_8, %c0_9] : memref<32x128xf32, #tpu.memory_space<vmem>>, vector<32x128xf32>
    %c0_10 = arith.constant 0 : index
    %c0_11 = arith.constant 0 : index
    %16 = vector.load %arg8[%c0_10, %c0_11] : memref<1x128xf32, #tpu.memory_space<vmem>>, vector<1x128xf32>
    %17 = vector.shape_cast %16 : vector<1x128xf32> to vector<1x128xf32>
    %18 = vector.broadcast %17 : vector<1x128xf32> to vector<8x128xf32>
    %c0_12 = arith.constant 0 : index
    %c0_13 = arith.constant 0 : index
    %19 = vector.load %arg1[%c0_12, %c0_13] : memref<64x32xf32, #tpu.memory_space<vmem>>, vector<64x32xf32>
    %c0_14 = arith.constant 0 : index
    %c0_15 = arith.constant 0 : index
    %20 = vector.load %arg3[%c0_14, %c0_15] : memref<32x128xf32, #tpu.memory_space<vmem>>, vector<32x128xf32>
    %cst_16 = arith.constant dense<0.000000e+00> : vector<64x128xf32>
    %21 = tpu.matmul %19, %20, %cst_16 {dimension_numbers = #tpu.dot_dimension_numbers<[1], [0], [0], [1], [0, 0, 1, 1], [], []>} : vector<64x32xf32>, vector<32x128xf32>, vector<64x128xf32> -> vector<64x128xf32>
    %c0_17 = arith.constant 0 : index
    %c0_18 = arith.constant 0 : index
    %22 = vector.load %arg5[%c0_17, %c0_18] : memref<1x128xf32, #tpu.memory_space<vmem>>, vector<1x128xf32>
    %23 = vector.broadcast %22 : vector<1x128xf32> to vector<64x128xf32>
    %24 = arith.addf %21, %23 : vector<64x128xf32>
    %cst_19 = arith.constant 0.000000e+00 : f32
    %25 = vector.broadcast %cst_19 : f32 to vector<8x32xf32>
    %cst_20 = arith.constant 0.000000e+00 : f32
    %26 = vector.broadcast %cst_20 : f32 to vector<8x32xf32>
    %cst_21 = arith.constant 0.000000e+00 : f32
    %27 = vector.broadcast %cst_21 : f32 to vector<8x32xf32>
    %cst_22 = arith.constant 0.000000e+00 : f32
    %28 = vector.broadcast %cst_22 : f32 to vector<8x32xf32>
    %c0_i32 = arith.constant 0 : i32
    %29 = vector.broadcast %c0_i32 : i32 to vector<8x1xi32>
    %30 = arith.cmpi sgt, %0, %29 : vector<8x1xi32>
    %31 = vector.shape_cast %30 : vector<8x1xi1> to vector<8x1xi1>
    %32 = vector.broadcast %31 : vector<8x1xi1> to vector<8x32xi1>
    %33 = vector.extract_strided_slice %24 {offsets = [0, 0], sizes = [8, 128], strides = [1, 1]} : vector<64x128xf32> to vector<8x128xf32>
    %cst_23 = arith.constant dense<0.000000e+00> : vector<8x128xf32>
    %34 = tpu.matmul %25, %13, %cst_23 {dimension_numbers = #tpu.dot_dimension_numbers<[1], [0], [0], [1], [0, 0, 1, 1], [], []>} : vector<8x32xf32>, vector<32x128xf32>, vector<8x128xf32> -> vector<8x128xf32>
    %35 = arith.addf %33, %34 : vector<8x128xf32>
    %36 = arith.mulf %35, %9 : vector<8x128xf32>
    %37 = math.tanh %36 : vector<8x128xf32>
    %38 = arith.mulf %37, %9 : vector<8x128xf32>
    %39 = arith.addf %38, %12 : vector<8x128xf32>
    %40 = vector.extract_strided_slice %39 {offsets = [0, 0], sizes = [8, 32], strides = [1, 1]} : vector<8x128xf32> to vector<8x32xf32>
    %41 = vector.extract_strided_slice %39 {offsets = [0, 32], sizes = [8, 32], strides = [1, 1]} : vector<8x128xf32> to vector<8x32xf32>
    %42 = vector.extract_strided_slice %39 {offsets = [0, 64], sizes = [8, 32], strides = [1, 1]} : vector<8x128xf32> to vector<8x32xf32>
    %43 = vector.extract_strided_slice %39 {offsets = [0, 96], sizes = [8, 32], strides = [1, 1]} : vector<8x128xf32> to vector<8x32xf32>
    %44 = arith.mulf %41, %26 : vector<8x32xf32>
    %45 = arith.mulf %40, %42 : vector<8x32xf32>
    %46 = arith.addf %44, %45 : vector<8x32xf32>
    %47 = math.tanh %46 : vector<8x32xf32>
    %48 = arith.mulf %43, %47 : vector<8x32xf32>
    %49 = arith.select %32, %48, %25 : vector<8x32xi1>, vector<8x32xf32>
    %50 = arith.select %32, %46, %26 : vector<8x32xi1>, vector<8x32xf32>
    %cst_24 = arith.constant dense<0.000000e+00> : vector<8x128xf32>
    %51 = tpu.matmul %49, %14, %cst_24 {dimension_numbers = #tpu.dot_dimension_numbers<[1], [0], [0], [1], [0, 0, 1, 1], [], []>} : vector<8x32xf32>, vector<32x128xf32>, vector<8x128xf32> -> vector<8x128xf32>
    %cst_25 = arith.constant dense<0.000000e+00> : vector<8x128xf32>
    %52 = tpu.matmul %27, %15, %cst_25 {dimension_numbers = #tpu.dot_dimension_numbers<[1], [0], [0], [1], [0, 0, 1, 1], [], []>} : vector<8x32xf32>, vector<32x128xf32>, vector<8x128xf32> -> vector<8x128xf32>
    %53 = arith.addf %51, %52 : vector<8x128xf32>
    %54 = arith.addf %53, %18 : vector<8x128xf32>
    %55 = arith.mulf %54, %9 : vector<8x128xf32>
    %56 = math.tanh %55 : vector<8x128xf32>
    %57 = arith.mulf %56, %9 : vector<8x128xf32>
    %58 = arith.addf %57, %12 : vector<8x128xf32>
    %59 = vector.extract_strided_slice %58 {offsets = [0, 0], sizes = [8, 32], strides = [1, 1]} : vector<8x128xf32> to vector<8x32xf32>
    %60 = vector.extract_strided_slice %58 {offsets = [0, 32], sizes = [8, 32], strides = [1, 1]} : vector<8x128xf32> to vector<8x32xf32>
    %61 = vector.extract_strided_slice %58 {offsets = [0, 64], sizes = [8, 32], strides = [1, 1]} : vector<8x128xf32> to vector<8x32xf32>
    %62 = vector.extract_strided_slice %58 {offsets = [0, 96], sizes = [8, 32], strides = [1, 1]} : vector<8x128xf32> to vector<8x32xf32>
    %63 = arith.mulf %60, %28 : vector<8x32xf32>
    %64 = arith.mulf %59, %61 : vector<8x32xf32>
    %65 = arith.addf %63, %64 : vector<8x32xf32>
    %66 = math.tanh %65 : vector<8x32xf32>
    %67 = arith.mulf %62, %66 : vector<8x32xf32>
    %68 = arith.select %32, %67, %27 : vector<8x32xi1>, vector<8x32xf32>
    %69 = arith.select %32, %65, %28 : vector<8x32xi1>, vector<8x32xf32>
    %c1_i32 = arith.constant 1 : i32
    %70 = vector.broadcast %c1_i32 : i32 to vector<8x1xi32>
    %71 = arith.cmpi sgt, %0, %70 : vector<8x1xi32>
    %72 = vector.shape_cast %71 : vector<8x1xi1> to vector<8x1xi1>
    %73 = vector.broadcast %72 : vector<8x1xi1> to vector<8x32xi1>
    %74 = vector.extract_strided_slice %24 {offsets = [8, 0], sizes = [8, 128], strides = [1, 1]} : vector<64x128xf32> to vector<8x128xf32>
    %cst_26 = arith.constant dense<0.000000e+00> : vector<8x128xf32>
    %75 = tpu.matmul %49, %13, %cst_26 {dimension_numbers = #tpu.dot_dimension_numbers<[1], [0], [0], [1], [0, 0, 1, 1], [], []>} : vector<8x32xf32>, vector<32x128xf32>, vector<8x128xf32> -> vector<8x128xf32>
    %76 = arith.addf %74, %75 : vector<8x128xf32>
    %77 = arith.mulf %76, %9 : vector<8x128xf32>
    %78 = math.tanh %77 : vector<8x128xf32>
    %79 = arith.mulf %78, %9 : vector<8x128xf32>
    %80 = arith.addf %79, %12 : vector<8x128xf32>
    %81 = vector.extract_strided_slice %80 {offsets = [0, 0], sizes = [8, 32], strides = [1, 1]} : vector<8x128xf32> to vector<8x32xf32>
    %82 = vector.extract_strided_slice %80 {offsets = [0, 32], sizes = [8, 32], strides = [1, 1]} : vector<8x128xf32> to vector<8x32xf32>
    %83 = vector.extract_strided_slice %80 {offsets = [0, 64], sizes = [8, 32], strides = [1, 1]} : vector<8x128xf32> to vector<8x32xf32>
    %84 = vector.extract_strided_slice %80 {offsets = [0, 96], sizes = [8, 32], strides = [1, 1]} : vector<8x128xf32> to vector<8x32xf32>
    %85 = arith.mulf %82, %50 : vector<8x32xf32>
    %86 = arith.mulf %81, %83 : vector<8x32xf32>
    %87 = arith.addf %85, %86 : vector<8x32xf32>
    %88 = math.tanh %87 : vector<8x32xf32>
    %89 = arith.mulf %84, %88 : vector<8x32xf32>
    %90 = arith.select %73, %89, %49 : vector<8x32xi1>, vector<8x32xf32>
    %91 = arith.select %73, %87, %50 : vector<8x32xi1>, vector<8x32xf32>
    %cst_27 = arith.constant dense<0.000000e+00> : vector<8x128xf32>
    %92 = tpu.matmul %90, %14, %cst_27 {dimension_numbers = #tpu.dot_dimension_numbers<[1], [0], [0], [1], [0, 0, 1, 1], [], []>} : vector<8x32xf32>, vector<32x128xf32>, vector<8x128xf32> -> vector<8x128xf32>
    %cst_28 = arith.constant dense<0.000000e+00> : vector<8x128xf32>
    %93 = tpu.matmul %68, %15, %cst_28 {dimension_numbers = #tpu.dot_dimension_numbers<[1], [0], [0], [1], [0, 0, 1, 1], [], []>} : vector<8x32xf32>, vector<32x128xf32>, vector<8x128xf32> -> vector<8x128xf32>
    %94 = arith.addf %92, %93 : vector<8x128xf32>
    %95 = arith.addf %94, %18 : vector<8x128xf32>
    %96 = arith.mulf %95, %9 : vector<8x128xf32>
    %97 = math.tanh %96 : vector<8x128xf32>
    %98 = arith.mulf %97, %9 : vector<8x128xf32>
    %99 = arith.addf %98, %12 : vector<8x128xf32>
    %100 = vector.extract_strided_slice %99 {offsets = [0, 0], sizes = [8, 32], strides = [1, 1]} : vector<8x128xf32> to vector<8x32xf32>
    %101 = vector.extract_strided_slice %99 {offsets = [0, 32], sizes = [8, 32], strides = [1, 1]} : vector<8x128xf32> to vector<8x32xf32>
    %102 = vector.extract_strided_slice %99 {offsets = [0, 64], sizes = [8, 32], strides = [1, 1]} : vector<8x128xf32> to vector<8x32xf32>
    %103 = vector.extract_strided_slice %99 {offsets = [0, 96], sizes = [8, 32], strides = [1, 1]} : vector<8x128xf32> to vector<8x32xf32>
    %104 = arith.mulf %101, %69 : vector<8x32xf32>
    %105 = arith.mulf %100, %102 : vector<8x32xf32>
    %106 = arith.addf %104, %105 : vector<8x32xf32>
    %107 = math.tanh %106 : vector<8x32xf32>
    %108 = arith.mulf %103, %107 : vector<8x32xf32>
    %109 = arith.select %73, %108, %68 : vector<8x32xi1>, vector<8x32xf32>
    %110 = arith.select %73, %106, %69 : vector<8x32xi1>, vector<8x32xf32>
    %c2_i32 = arith.constant 2 : i32
    %111 = vector.broadcast %c2_i32 : i32 to vector<8x1xi32>
    %112 = arith.cmpi sgt, %0, %111 : vector<8x1xi32>
    %113 = vector.shape_cast %112 : vector<8x1xi1> to vector<8x1xi1>
    %114 = vector.broadcast %113 : vector<8x1xi1> to vector<8x32xi1>
    %115 = vector.extract_strided_slice %24 {offsets = [16, 0], sizes = [8, 128], strides = [1, 1]} : vector<64x128xf32> to vector<8x128xf32>
    %cst_29 = arith.constant dense<0.000000e+00> : vector<8x128xf32>
    %116 = tpu.matmul %90, %13, %cst_29 {dimension_numbers = #tpu.dot_dimension_numbers<[1], [0], [0], [1], [0, 0, 1, 1], [], []>} : vector<8x32xf32>, vector<32x128xf32>, vector<8x128xf32> -> vector<8x128xf32>
    %117 = arith.addf %115, %116 : vector<8x128xf32>
    %118 = arith.mulf %117, %9 : vector<8x128xf32>
    %119 = math.tanh %118 : vector<8x128xf32>
    %120 = arith.mulf %119, %9 : vector<8x128xf32>
    %121 = arith.addf %120, %12 : vector<8x128xf32>
    %122 = vector.extract_strided_slice %121 {offsets = [0, 0], sizes = [8, 32], strides = [1, 1]} : vector<8x128xf32> to vector<8x32xf32>
    %123 = vector.extract_strided_slice %121 {offsets = [0, 32], sizes = [8, 32], strides = [1, 1]} : vector<8x128xf32> to vector<8x32xf32>
    %124 = vector.extract_strided_slice %121 {offsets = [0, 64], sizes = [8, 32], strides = [1, 1]} : vector<8x128xf32> to vector<8x32xf32>
    %125 = vector.extract_strided_slice %121 {offsets = [0, 96], sizes = [8, 32], strides = [1, 1]} : vector<8x128xf32> to vector<8x32xf32>
    %126 = arith.mulf %123, %91 : vector<8x32xf32>
    %127 = arith.mulf %122, %124 : vector<8x32xf32>
    %128 = arith.addf %126, %127 : vector<8x32xf32>
    %129 = math.tanh %128 : vector<8x32xf32>
    %130 = arith.mulf %125, %129 : vector<8x32xf32>
    %131 = arith.select %114, %130, %90 : vector<8x32xi1>, vector<8x32xf32>
    %132 = arith.select %114, %128, %91 : vector<8x32xi1>, vector<8x32xf32>
    %cst_30 = arith.constant dense<0.000000e+00> : vector<8x128xf32>
    %133 = tpu.matmul %131, %14, %cst_30 {dimension_numbers = #tpu.dot_dimension_numbers<[1], [0], [0], [1], [0, 0, 1, 1], [], []>} : vector<8x32xf32>, vector<32x128xf32>, vector<8x128xf32> -> vector<8x128xf32>
    %cst_31 = arith.constant dense<0.000000e+00> : vector<8x128xf32>
    %134 = tpu.matmul %109, %15, %cst_31 {dimension_numbers = #tpu.dot_dimension_numbers<[1], [0], [0], [1], [0, 0, 1, 1], [], []>} : vector<8x32xf32>, vector<32x128xf32>, vector<8x128xf32> -> vector<8x128xf32>
    %135 = arith.addf %133, %134 : vector<8x128xf32>
    %136 = arith.addf %135, %18 : vector<8x128xf32>
    %137 = arith.mulf %136, %9 : vector<8x128xf32>
    %138 = math.tanh %137 : vector<8x128xf32>
    %139 = arith.mulf %138, %9 : vector<8x128xf32>
    %140 = arith.addf %139, %12 : vector<8x128xf32>
    %141 = vector.extract_strided_slice %140 {offsets = [0, 0], sizes = [8, 32], strides = [1, 1]} : vector<8x128xf32> to vector<8x32xf32>
    %142 = vector.extract_strided_slice %140 {offsets = [0, 32], sizes = [8, 32], strides = [1, 1]} : vector<8x128xf32> to vector<8x32xf32>
    %143 = vector.extract_strided_slice %140 {offsets = [0, 64], sizes = [8, 32], strides = [1, 1]} : vector<8x128xf32> to vector<8x32xf32>
    %144 = vector.extract_strided_slice %140 {offsets = [0, 96], sizes = [8, 32], strides = [1, 1]} : vector<8x128xf32> to vector<8x32xf32>
    %145 = arith.mulf %142, %110 : vector<8x32xf32>
    %146 = arith.mulf %141, %143 : vector<8x32xf32>
    %147 = arith.addf %145, %146 : vector<8x32xf32>
    %148 = math.tanh %147 : vector<8x32xf32>
    %149 = arith.mulf %144, %148 : vector<8x32xf32>
    %150 = arith.select %114, %149, %109 : vector<8x32xi1>, vector<8x32xf32>
    %151 = arith.select %114, %147, %110 : vector<8x32xi1>, vector<8x32xf32>
    %c3_i32 = arith.constant 3 : i32
    %152 = vector.broadcast %c3_i32 : i32 to vector<8x1xi32>
    %153 = arith.cmpi sgt, %0, %152 : vector<8x1xi32>
    %154 = vector.shape_cast %153 : vector<8x1xi1> to vector<8x1xi1>
    %155 = vector.broadcast %154 : vector<8x1xi1> to vector<8x32xi1>
    %156 = vector.extract_strided_slice %24 {offsets = [24, 0], sizes = [8, 128], strides = [1, 1]} : vector<64x128xf32> to vector<8x128xf32>
    %cst_32 = arith.constant dense<0.000000e+00> : vector<8x128xf32>
    %157 = tpu.matmul %131, %13, %cst_32 {dimension_numbers = #tpu.dot_dimension_numbers<[1], [0], [0], [1], [0, 0, 1, 1], [], []>} : vector<8x32xf32>, vector<32x128xf32>, vector<8x128xf32> -> vector<8x128xf32>
    %158 = arith.addf %156, %157 : vector<8x128xf32>
    %159 = arith.mulf %158, %9 : vector<8x128xf32>
    %160 = math.tanh %159 : vector<8x128xf32>
    %161 = arith.mulf %160, %9 : vector<8x128xf32>
    %162 = arith.addf %161, %12 : vector<8x128xf32>
    %163 = vector.extract_strided_slice %162 {offsets = [0, 0], sizes = [8, 32], strides = [1, 1]} : vector<8x128xf32> to vector<8x32xf32>
    %164 = vector.extract_strided_slice %162 {offsets = [0, 32], sizes = [8, 32], strides = [1, 1]} : vector<8x128xf32> to vector<8x32xf32>
    %165 = vector.extract_strided_slice %162 {offsets = [0, 64], sizes = [8, 32], strides = [1, 1]} : vector<8x128xf32> to vector<8x32xf32>
    %166 = vector.extract_strided_slice %162 {offsets = [0, 96], sizes = [8, 32], strides = [1, 1]} : vector<8x128xf32> to vector<8x32xf32>
    %167 = arith.mulf %164, %132 : vector<8x32xf32>
    %168 = arith.mulf %163, %165 : vector<8x32xf32>
    %169 = arith.addf %167, %168 : vector<8x32xf32>
    %170 = math.tanh %169 : vector<8x32xf32>
    %171 = arith.mulf %166, %170 : vector<8x32xf32>
    %172 = arith.select %155, %171, %131 : vector<8x32xi1>, vector<8x32xf32>
    %173 = arith.select %155, %169, %132 : vector<8x32xi1>, vector<8x32xf32>
    %cst_33 = arith.constant dense<0.000000e+00> : vector<8x128xf32>
    %174 = tpu.matmul %172, %14, %cst_33 {dimension_numbers = #tpu.dot_dimension_numbers<[1], [0], [0], [1], [0, 0, 1, 1], [], []>} : vector<8x32xf32>, vector<32x128xf32>, vector<8x128xf32> -> vector<8x128xf32>
    %cst_34 = arith.constant dense<0.000000e+00> : vector<8x128xf32>
    %175 = tpu.matmul %150, %15, %cst_34 {dimension_numbers = #tpu.dot_dimension_numbers<[1], [0], [0], [1], [0, 0, 1, 1], [], []>} : vector<8x32xf32>, vector<32x128xf32>, vector<8x128xf32> -> vector<8x128xf32>
    %176 = arith.addf %174, %175 : vector<8x128xf32>
    %177 = arith.addf %176, %18 : vector<8x128xf32>
    %178 = arith.mulf %177, %9 : vector<8x128xf32>
    %179 = math.tanh %178 : vector<8x128xf32>
    %180 = arith.mulf %179, %9 : vector<8x128xf32>
    %181 = arith.addf %180, %12 : vector<8x128xf32>
    %182 = vector.extract_strided_slice %181 {offsets = [0, 0], sizes = [8, 32], strides = [1, 1]} : vector<8x128xf32> to vector<8x32xf32>
    %183 = vector.extract_strided_slice %181 {offsets = [0, 32], sizes = [8, 32], strides = [1, 1]} : vector<8x128xf32> to vector<8x32xf32>
    %184 = vector.extract_strided_slice %181 {offsets = [0, 64], sizes = [8, 32], strides = [1, 1]} : vector<8x128xf32> to vector<8x32xf32>
    %185 = vector.extract_strided_slice %181 {offsets = [0, 96], sizes = [8, 32], strides = [1, 1]} : vector<8x128xf32> to vector<8x32xf32>
    %186 = arith.mulf %183, %151 : vector<8x32xf32>
    %187 = arith.mulf %182, %184 : vector<8x32xf32>
    %188 = arith.addf %186, %187 : vector<8x32xf32>
    %189 = math.tanh %188 : vector<8x32xf32>
    %190 = arith.mulf %185, %189 : vector<8x32xf32>
    %191 = arith.select %155, %190, %150 : vector<8x32xi1>, vector<8x32xf32>
    %192 = arith.select %155, %188, %151 : vector<8x32xi1>, vector<8x32xf32>
    %c4_i32 = arith.constant 4 : i32
    %193 = vector.broadcast %c4_i32 : i32 to vector<8x1xi32>
    %194 = arith.cmpi sgt, %0, %193 : vector<8x1xi32>
    %195 = vector.shape_cast %194 : vector<8x1xi1> to vector<8x1xi1>
    %196 = vector.broadcast %195 : vector<8x1xi1> to vector<8x32xi1>
    %197 = vector.extract_strided_slice %24 {offsets = [32, 0], sizes = [8, 128], strides = [1, 1]} : vector<64x128xf32> to vector<8x128xf32>
    %cst_35 = arith.constant dense<0.000000e+00> : vector<8x128xf32>
    %198 = tpu.matmul %172, %13, %cst_35 {dimension_numbers = #tpu.dot_dimension_numbers<[1], [0], [0], [1], [0, 0, 1, 1], [], []>} : vector<8x32xf32>, vector<32x128xf32>, vector<8x128xf32> -> vector<8x128xf32>
    %199 = arith.addf %197, %198 : vector<8x128xf32>
    %200 = arith.mulf %199, %9 : vector<8x128xf32>
    %201 = math.tanh %200 : vector<8x128xf32>
    %202 = arith.mulf %201, %9 : vector<8x128xf32>
    %203 = arith.addf %202, %12 : vector<8x128xf32>
    %204 = vector.extract_strided_slice %203 {offsets = [0, 0], sizes = [8, 32], strides = [1, 1]} : vector<8x128xf32> to vector<8x32xf32>
    %205 = vector.extract_strided_slice %203 {offsets = [0, 32], sizes = [8, 32], strides = [1, 1]} : vector<8x128xf32> to vector<8x32xf32>
    %206 = vector.extract_strided_slice %203 {offsets = [0, 64], sizes = [8, 32], strides = [1, 1]} : vector<8x128xf32> to vector<8x32xf32>
    %207 = vector.extract_strided_slice %203 {offsets = [0, 96], sizes = [8, 32], strides = [1, 1]} : vector<8x128xf32> to vector<8x32xf32>
    %208 = arith.mulf %205, %173 : vector<8x32xf32>
    %209 = arith.mulf %204, %206 : vector<8x32xf32>
    %210 = arith.addf %208, %209 : vector<8x32xf32>
    %211 = math.tanh %210 : vector<8x32xf32>
    %212 = arith.mulf %207, %211 : vector<8x32xf32>
    %213 = arith.select %196, %212, %172 : vector<8x32xi1>, vector<8x32xf32>
    %214 = arith.select %196, %210, %173 : vector<8x32xi1>, vector<8x32xf32>
    %cst_36 = arith.constant dense<0.000000e+00> : vector<8x128xf32>
    %215 = tpu.matmul %213, %14, %cst_36 {dimension_numbers = #tpu.dot_dimension_numbers<[1], [0], [0], [1], [0, 0, 1, 1], [], []>} : vector<8x32xf32>, vector<32x128xf32>, vector<8x128xf32> -> vector<8x128xf32>
    %cst_37 = arith.constant dense<0.000000e+00> : vector<8x128xf32>
    %216 = tpu.matmul %191, %15, %cst_37 {dimension_numbers = #tpu.dot_dimension_numbers<[1], [0], [0], [1], [0, 0, 1, 1], [], []>} : vector<8x32xf32>, vector<32x128xf32>, vector<8x128xf32> -> vector<8x128xf32>
    %217 = arith.addf %215, %216 : vector<8x128xf32>
    %218 = arith.addf %217, %18 : vector<8x128xf32>
    %219 = arith.mulf %218, %9 : vector<8x128xf32>
    %220 = math.tanh %219 : vector<8x128xf32>
    %221 = arith.mulf %220, %9 : vector<8x128xf32>
    %222 = arith.addf %221, %12 : vector<8x128xf32>
    %223 = vector.extract_strided_slice %222 {offsets = [0, 0], sizes = [8, 32], strides = [1, 1]} : vector<8x128xf32> to vector<8x32xf32>
    %224 = vector.extract_strided_slice %222 {offsets = [0, 32], sizes = [8, 32], strides = [1, 1]} : vector<8x128xf32> to vector<8x32xf32>
    %225 = vector.extract_strided_slice %222 {offsets = [0, 64], sizes = [8, 32], strides = [1, 1]} : vector<8x128xf32> to vector<8x32xf32>
    %226 = vector.extract_strided_slice %222 {offsets = [0, 96], sizes = [8, 32], strides = [1, 1]} : vector<8x128xf32> to vector<8x32xf32>
    %227 = arith.mulf %224, %192 : vector<8x32xf32>
    %228 = arith.mulf %223, %225 : vector<8x32xf32>
    %229 = arith.addf %227, %228 : vector<8x32xf32>
    %230 = math.tanh %229 : vector<8x32xf32>
    %231 = arith.mulf %226, %230 : vector<8x32xf32>
    %232 = arith.select %196, %231, %191 : vector<8x32xi1>, vector<8x32xf32>
    %233 = arith.select %196, %229, %192 : vector<8x32xi1>, vector<8x32xf32>
    %c5_i32 = arith.constant 5 : i32
    %234 = vector.broadcast %c5_i32 : i32 to vector<8x1xi32>
    %235 = arith.cmpi sgt, %0, %234 : vector<8x1xi32>
    %236 = vector.shape_cast %235 : vector<8x1xi1> to vector<8x1xi1>
    %237 = vector.broadcast %236 : vector<8x1xi1> to vector<8x32xi1>
    %238 = vector.extract_strided_slice %24 {offsets = [40, 0], sizes = [8, 128], strides = [1, 1]} : vector<64x128xf32> to vector<8x128xf32>
    %cst_38 = arith.constant dense<0.000000e+00> : vector<8x128xf32>
    %239 = tpu.matmul %213, %13, %cst_38 {dimension_numbers = #tpu.dot_dimension_numbers<[1], [0], [0], [1], [0, 0, 1, 1], [], []>} : vector<8x32xf32>, vector<32x128xf32>, vector<8x128xf32> -> vector<8x128xf32>
    %240 = arith.addf %238, %239 : vector<8x128xf32>
    %241 = arith.mulf %240, %9 : vector<8x128xf32>
    %242 = math.tanh %241 : vector<8x128xf32>
    %243 = arith.mulf %242, %9 : vector<8x128xf32>
    %244 = arith.addf %243, %12 : vector<8x128xf32>
    %245 = vector.extract_strided_slice %244 {offsets = [0, 0], sizes = [8, 32], strides = [1, 1]} : vector<8x128xf32> to vector<8x32xf32>
    %246 = vector.extract_strided_slice %244 {offsets = [0, 32], sizes = [8, 32], strides = [1, 1]} : vector<8x128xf32> to vector<8x32xf32>
    %247 = vector.extract_strided_slice %244 {offsets = [0, 64], sizes = [8, 32], strides = [1, 1]} : vector<8x128xf32> to vector<8x32xf32>
    %248 = vector.extract_strided_slice %244 {offsets = [0, 96], sizes = [8, 32], strides = [1, 1]} : vector<8x128xf32> to vector<8x32xf32>
    %249 = arith.mulf %246, %214 : vector<8x32xf32>
    %250 = arith.mulf %245, %247 : vector<8x32xf32>
    %251 = arith.addf %249, %250 : vector<8x32xf32>
    %252 = math.tanh %251 : vector<8x32xf32>
    %253 = arith.mulf %248, %252 : vector<8x32xf32>
    %254 = arith.select %237, %253, %213 : vector<8x32xi1>, vector<8x32xf32>
    %255 = arith.select %237, %251, %214 : vector<8x32xi1>, vector<8x32xf32>
    %cst_39 = arith.constant dense<0.000000e+00> : vector<8x128xf32>
    %256 = tpu.matmul %254, %14, %cst_39 {dimension_numbers = #tpu.dot_dimension_numbers<[1], [0], [0], [1], [0, 0, 1, 1], [], []>} : vector<8x32xf32>, vector<32x128xf32>, vector<8x128xf32> -> vector<8x128xf32>
    %cst_40 = arith.constant dense<0.000000e+00> : vector<8x128xf32>
    %257 = tpu.matmul %232, %15, %cst_40 {dimension_numbers = #tpu.dot_dimension_numbers<[1], [0], [0], [1], [0, 0, 1, 1], [], []>} : vector<8x32xf32>, vector<32x128xf32>, vector<8x128xf32> -> vector<8x128xf32>
    %258 = arith.addf %256, %257 : vector<8x128xf32>
    %259 = arith.addf %258, %18 : vector<8x128xf32>
    %260 = arith.mulf %259, %9 : vector<8x128xf32>
    %261 = math.tanh %260 : vector<8x128xf32>
    %262 = arith.mulf %261, %9 : vector<8x128xf32>
    %263 = arith.addf %262, %12 : vector<8x128xf32>
    %264 = vector.extract_strided_slice %263 {offsets = [0, 0], sizes = [8, 32], strides = [1, 1]} : vector<8x128xf32> to vector<8x32xf32>
    %265 = vector.extract_strided_slice %263 {offsets = [0, 32], sizes = [8, 32], strides = [1, 1]} : vector<8x128xf32> to vector<8x32xf32>
    %266 = vector.extract_strided_slice %263 {offsets = [0, 64], sizes = [8, 32], strides = [1, 1]} : vector<8x128xf32> to vector<8x32xf32>
    %267 = vector.extract_strided_slice %263 {offsets = [0, 96], sizes = [8, 32], strides = [1, 1]} : vector<8x128xf32> to vector<8x32xf32>
    %268 = arith.mulf %265, %233 : vector<8x32xf32>
    %269 = arith.mulf %264, %266 : vector<8x32xf32>
    %270 = arith.addf %268, %269 : vector<8x32xf32>
    %271 = math.tanh %270 : vector<8x32xf32>
    %272 = arith.mulf %267, %271 : vector<8x32xf32>
    %273 = arith.select %237, %272, %232 : vector<8x32xi1>, vector<8x32xf32>
    %274 = arith.select %237, %270, %233 : vector<8x32xi1>, vector<8x32xf32>
    %c6_i32 = arith.constant 6 : i32
    %275 = vector.broadcast %c6_i32 : i32 to vector<8x1xi32>
    %276 = arith.cmpi sgt, %0, %275 : vector<8x1xi32>
    %277 = vector.shape_cast %276 : vector<8x1xi1> to vector<8x1xi1>
    %278 = vector.broadcast %277 : vector<8x1xi1> to vector<8x32xi1>
    %279 = vector.extract_strided_slice %24 {offsets = [48, 0], sizes = [8, 128], strides = [1, 1]} : vector<64x128xf32> to vector<8x128xf32>
    %cst_41 = arith.constant dense<0.000000e+00> : vector<8x128xf32>
    %280 = tpu.matmul %254, %13, %cst_41 {dimension_numbers = #tpu.dot_dimension_numbers<[1], [0], [0], [1], [0, 0, 1, 1], [], []>} : vector<8x32xf32>, vector<32x128xf32>, vector<8x128xf32> -> vector<8x128xf32>
    %281 = arith.addf %279, %280 : vector<8x128xf32>
    %282 = arith.mulf %281, %9 : vector<8x128xf32>
    %283 = math.tanh %282 : vector<8x128xf32>
    %284 = arith.mulf %283, %9 : vector<8x128xf32>
    %285 = arith.addf %284, %12 : vector<8x128xf32>
    %286 = vector.extract_strided_slice %285 {offsets = [0, 0], sizes = [8, 32], strides = [1, 1]} : vector<8x128xf32> to vector<8x32xf32>
    %287 = vector.extract_strided_slice %285 {offsets = [0, 32], sizes = [8, 32], strides = [1, 1]} : vector<8x128xf32> to vector<8x32xf32>
    %288 = vector.extract_strided_slice %285 {offsets = [0, 64], sizes = [8, 32], strides = [1, 1]} : vector<8x128xf32> to vector<8x32xf32>
    %289 = vector.extract_strided_slice %285 {offsets = [0, 96], sizes = [8, 32], strides = [1, 1]} : vector<8x128xf32> to vector<8x32xf32>
    %290 = arith.mulf %287, %255 : vector<8x32xf32>
    %291 = arith.mulf %286, %288 : vector<8x32xf32>
    %292 = arith.addf %290, %291 : vector<8x32xf32>
    %293 = math.tanh %292 : vector<8x32xf32>
    %294 = arith.mulf %289, %293 : vector<8x32xf32>
    %295 = arith.select %278, %294, %254 : vector<8x32xi1>, vector<8x32xf32>
    %296 = arith.select %278, %292, %255 : vector<8x32xi1>, vector<8x32xf32>
    %cst_42 = arith.constant dense<0.000000e+00> : vector<8x128xf32>
    %297 = tpu.matmul %295, %14, %cst_42 {dimension_numbers = #tpu.dot_dimension_numbers<[1], [0], [0], [1], [0, 0, 1, 1], [], []>} : vector<8x32xf32>, vector<32x128xf32>, vector<8x128xf32> -> vector<8x128xf32>
    %cst_43 = arith.constant dense<0.000000e+00> : vector<8x128xf32>
    %298 = tpu.matmul %273, %15, %cst_43 {dimension_numbers = #tpu.dot_dimension_numbers<[1], [0], [0], [1], [0, 0, 1, 1], [], []>} : vector<8x32xf32>, vector<32x128xf32>, vector<8x128xf32> -> vector<8x128xf32>
    %299 = arith.addf %297, %298 : vector<8x128xf32>
    %300 = arith.addf %299, %18 : vector<8x128xf32>
    %301 = arith.mulf %300, %9 : vector<8x128xf32>
    %302 = math.tanh %301 : vector<8x128xf32>
    %303 = arith.mulf %302, %9 : vector<8x128xf32>
    %304 = arith.addf %303, %12 : vector<8x128xf32>
    %305 = vector.extract_strided_slice %304 {offsets = [0, 0], sizes = [8, 32], strides = [1, 1]} : vector<8x128xf32> to vector<8x32xf32>
    %306 = vector.extract_strided_slice %304 {offsets = [0, 32], sizes = [8, 32], strides = [1, 1]} : vector<8x128xf32> to vector<8x32xf32>
    %307 = vector.extract_strided_slice %304 {offsets = [0, 64], sizes = [8, 32], strides = [1, 1]} : vector<8x128xf32> to vector<8x32xf32>
    %308 = vector.extract_strided_slice %304 {offsets = [0, 96], sizes = [8, 32], strides = [1, 1]} : vector<8x128xf32> to vector<8x32xf32>
    %309 = arith.mulf %306, %274 : vector<8x32xf32>
    %310 = arith.mulf %305, %307 : vector<8x32xf32>
    %311 = arith.addf %309, %310 : vector<8x32xf32>
    %312 = math.tanh %311 : vector<8x32xf32>
    %313 = arith.mulf %308, %312 : vector<8x32xf32>
    %314 = arith.select %278, %313, %273 : vector<8x32xi1>, vector<8x32xf32>
    %315 = arith.select %278, %311, %274 : vector<8x32xi1>, vector<8x32xf32>
    %c7_i32 = arith.constant 7 : i32
    %316 = vector.broadcast %c7_i32 : i32 to vector<8x1xi32>
    %317 = arith.cmpi sgt, %0, %316 : vector<8x1xi32>
    %318 = vector.shape_cast %317 : vector<8x1xi1> to vector<8x1xi1>
    %319 = vector.broadcast %318 : vector<8x1xi1> to vector<8x32xi1>
    %320 = vector.extract_strided_slice %24 {offsets = [56, 0], sizes = [8, 128], strides = [1, 1]} : vector<64x128xf32> to vector<8x128xf32>
    %cst_44 = arith.constant dense<0.000000e+00> : vector<8x128xf32>
    %321 = tpu.matmul %295, %13, %cst_44 {dimension_numbers = #tpu.dot_dimension_numbers<[1], [0], [0], [1], [0, 0, 1, 1], [], []>} : vector<8x32xf32>, vector<32x128xf32>, vector<8x128xf32> -> vector<8x128xf32>
    %322 = arith.addf %320, %321 : vector<8x128xf32>
    %323 = arith.mulf %322, %9 : vector<8x128xf32>
    %324 = math.tanh %323 : vector<8x128xf32>
    %325 = arith.mulf %324, %9 : vector<8x128xf32>
    %326 = arith.addf %325, %12 : vector<8x128xf32>
    %327 = vector.extract_strided_slice %326 {offsets = [0, 0], sizes = [8, 32], strides = [1, 1]} : vector<8x128xf32> to vector<8x32xf32>
    %328 = vector.extract_strided_slice %326 {offsets = [0, 32], sizes = [8, 32], strides = [1, 1]} : vector<8x128xf32> to vector<8x32xf32>
    %329 = vector.extract_strided_slice %326 {offsets = [0, 64], sizes = [8, 32], strides = [1, 1]} : vector<8x128xf32> to vector<8x32xf32>
    %330 = vector.extract_strided_slice %326 {offsets = [0, 96], sizes = [8, 32], strides = [1, 1]} : vector<8x128xf32> to vector<8x32xf32>
    %331 = arith.mulf %328, %296 : vector<8x32xf32>
    %332 = arith.mulf %327, %329 : vector<8x32xf32>
    %333 = arith.addf %331, %332 : vector<8x32xf32>
    %334 = math.tanh %333 : vector<8x32xf32>
    %335 = arith.mulf %330, %334 : vector<8x32xf32>
    %336 = arith.select %319, %335, %295 : vector<8x32xi1>, vector<8x32xf32>
    %cst_45 = arith.constant dense<0.000000e+00> : vector<8x128xf32>
    %337 = tpu.matmul %336, %14, %cst_45 {dimension_numbers = #tpu.dot_dimension_numbers<[1], [0], [0], [1], [0, 0, 1, 1], [], []>} : vector<8x32xf32>, vector<32x128xf32>, vector<8x128xf32> -> vector<8x128xf32>
    %cst_46 = arith.constant dense<0.000000e+00> : vector<8x128xf32>
    %338 = tpu.matmul %314, %15, %cst_46 {dimension_numbers = #tpu.dot_dimension_numbers<[1], [0], [0], [1], [0, 0, 1, 1], [], []>} : vector<8x32xf32>, vector<32x128xf32>, vector<8x128xf32> -> vector<8x128xf32>
    %339 = arith.addf %337, %338 : vector<8x128xf32>
    %340 = arith.addf %339, %18 : vector<8x128xf32>
    %341 = arith.mulf %340, %9 : vector<8x128xf32>
    %342 = math.tanh %341 : vector<8x128xf32>
    %343 = arith.mulf %342, %9 : vector<8x128xf32>
    %344 = arith.addf %343, %12 : vector<8x128xf32>
    %345 = vector.extract_strided_slice %344 {offsets = [0, 0], sizes = [8, 32], strides = [1, 1]} : vector<8x128xf32> to vector<8x32xf32>
    %346 = vector.extract_strided_slice %344 {offsets = [0, 32], sizes = [8, 32], strides = [1, 1]} : vector<8x128xf32> to vector<8x32xf32>
    %347 = vector.extract_strided_slice %344 {offsets = [0, 64], sizes = [8, 32], strides = [1, 1]} : vector<8x128xf32> to vector<8x32xf32>
    %348 = vector.extract_strided_slice %344 {offsets = [0, 96], sizes = [8, 32], strides = [1, 1]} : vector<8x128xf32> to vector<8x32xf32>
    %349 = arith.mulf %346, %315 : vector<8x32xf32>
    %350 = arith.mulf %345, %347 : vector<8x32xf32>
    %351 = arith.addf %349, %350 : vector<8x32xf32>
    %352 = math.tanh %351 : vector<8x32xf32>
    %353 = arith.mulf %348, %352 : vector<8x32xf32>
    %354 = arith.select %319, %353, %314 : vector<8x32xi1>, vector<8x32xf32>
    %c0_47 = arith.constant 0 : index
    %c0_48 = arith.constant 0 : index
    %355 = vector.load %arg9[%c0_47, %c0_48] : memref<32x32xf32, #tpu.memory_space<vmem>>, vector<32x32xf32>
    %cst_49 = arith.constant dense<0.000000e+00> : vector<8x32xf32>
    %356 = tpu.matmul %354, %355, %cst_49 {dimension_numbers = #tpu.dot_dimension_numbers<[1], [0], [0], [1], [0, 0, 1, 1], [], []>} : vector<8x32xf32>, vector<32x32xf32>, vector<8x32xf32> -> vector<8x32xf32>
    %c0_50 = arith.constant 0 : index
    %c0_51 = arith.constant 0 : index
    %357 = vector.load %arg10[%c0_50, %c0_51] : memref<1x32xf32, #tpu.memory_space<vmem>>, vector<1x32xf32>
    %358 = vector.broadcast %357 : vector<1x32xf32> to vector<8x32xf32>
    %359 = arith.addf %356, %358 : vector<8x32xf32>
    %cst_52 = arith.constant 0.000000e+00 : f32
    %360 = vector.broadcast %cst_52 : f32 to vector<8x32xf32>
    %361 = arith.maximumf %359, %360 : vector<8x32xf32>
    %c0_53 = arith.constant 0 : index
    %c0_54 = arith.constant 0 : index
    %362 = vector.load %arg11[%c0_53, %c0_54] : memref<32x64xf32, #tpu.memory_space<vmem>>, vector<32x64xf32>
    %cst_55 = arith.constant dense<0.000000e+00> : vector<8x64xf32>
    %363 = tpu.matmul %361, %362, %cst_55 {dimension_numbers = #tpu.dot_dimension_numbers<[1], [0], [0], [1], [0, 0, 1, 1], [], []>} : vector<8x32xf32>, vector<32x64xf32>, vector<8x64xf32> -> vector<8x64xf32>
    %c0_56 = arith.constant 0 : index
    %c0_57 = arith.constant 0 : index
    %364 = vector.load %arg12[%c0_56, %c0_57] : memref<1x64xf32, #tpu.memory_space<vmem>>, vector<1x64xf32>
    %365 = vector.broadcast %364 : vector<1x64xf32> to vector<8x64xf32>
    %366 = arith.addf %363, %365 : vector<8x64xf32>
    %cst_58 = arith.constant 0.000000e+00 : f32
    %367 = vector.broadcast %cst_58 : f32 to vector<8x64xf32>
    %368 = arith.maximumf %366, %367 : vector<8x64xf32>
    %c0_59 = arith.constant 0 : index
    %c0_60 = arith.constant 0 : index
    %369 = vector.load %arg13[%c0_59, %c0_60] : memref<64x32xf32, #tpu.memory_space<vmem>>, vector<64x32xf32>
    %cst_61 = arith.constant dense<0.000000e+00> : vector<8x32xf32>
    %370 = tpu.matmul %368, %369, %cst_61 {dimension_numbers = #tpu.dot_dimension_numbers<[1], [0], [0], [1], [0, 0, 1, 1], [], []>} : vector<8x64xf32>, vector<64x32xf32>, vector<8x32xf32> -> vector<8x32xf32>
    %c0_62 = arith.constant 0 : index
    %c0_63 = arith.constant 0 : index
    %371 = vector.load %arg14[%c0_62, %c0_63] : memref<1x32xf32, #tpu.memory_space<vmem>>, vector<1x32xf32>
    %372 = vector.broadcast %371 : vector<1x32xf32> to vector<8x32xf32>
    %373 = arith.addf %370, %372 : vector<8x32xf32>
    %cst_64 = arith.constant 0.000000e+00 : f32
    %374 = vector.broadcast %cst_64 : f32 to vector<8x32xf32>
    %375 = arith.maximumf %373, %374 : vector<8x32xf32>
    %c0_65 = arith.constant 0 : index
    %c0_66 = arith.constant 0 : index
    %376 = vector.load %arg15[%c0_65, %c0_66] : memref<32x256xf32, #tpu.memory_space<vmem>>, vector<32x256xf32>
    %cst_67 = arith.constant dense<0.000000e+00> : vector<8x256xf32>
    %377 = tpu.matmul %375, %376, %cst_67 {dimension_numbers = #tpu.dot_dimension_numbers<[1], [0], [0], [1], [0, 0, 1, 1], [], []>} : vector<8x32xf32>, vector<32x256xf32>, vector<8x256xf32> -> vector<8x256xf32>
    %c0_68 = arith.constant 0 : index
    %c0_69 = arith.constant 0 : index
    %378 = vector.load %arg16[%c0_68, %c0_69] : memref<1x256xf32, #tpu.memory_space<vmem>>, vector<1x256xf32>
    %379 = vector.broadcast %378 : vector<1x256xf32> to vector<8x256xf32>
    %380 = arith.addf %377, %379 : vector<8x256xf32>
    %c0_70 = arith.constant 0 : index
    %c0_71 = arith.constant 0 : index
    %381 = vector.load %arg17[%c0_70, %c0_71] : memref<8x256xf32, #tpu.memory_space<vmem>>, vector<8x256xf32>
    tpu.vector_store %arg17[%c0_70, %c0_71], %380 {strides = array<i32>} : memref<8x256xf32, #tpu.memory_space<vmem>>, vector<8x256xf32>,
    return
  }
  func.func @transform_0(%arg0: i32) -> (i32, i32) {
    %c0_i32 = arith.constant 0 : i32
    %c0_i32_0 = arith.constant 0 : i32
    %c0_i32_1 = arith.constant 0 : i32
    return %c0_i32, %c0_i32_0 : i32, i32
  }
  func.func @transform_1(%arg0: i32) -> (i32, i32) {
    %c0_i32 = arith.constant 0 : i32
    %c0_i32_0 = arith.constant 0 : i32
    %c0_i32_1 = arith.constant 0 : i32
    return %c0_i32, %c0_i32_0 : i32, i32
  }
  func.func @transform_2(%arg0: i32) -> (i32, i32) {
    %c0_i32 = arith.constant 0 : i32
    %c0_i32_0 = arith.constant 0 : i32
    %c0_i32_1 = arith.constant 0 : i32
    return %c0_i32, %c0_i32_0 : i32, i32
  }
  func.func @transform_3(%arg0: i32) -> (i32, i32) {
    %c0_i32 = arith.constant 0 : i32
    %c0_i32_0 = arith.constant 0 : i32
    %c0_i32_1 = arith.constant 0 : i32
    return %c0_i32, %c0_i32_0 : i32, i32
  }
  func.func @transform_4(%arg0: i32) -> (i32, i32) {
    %c0_i32 = arith.constant 0 : i32
    %c0_i32_0 = arith.constant 0 : i32
    %c0_i32_1 = arith.constant 0 : i32
    return %c0_i32, %c0_i32_0 : i32, i32
  }
  func.func @transform_5(%arg0: i32) -> (i32, i32) {
    %c0_i32 = arith.constant 0 : i32
    %c0_i32_0 = arith.constant 0 : i32
    %c0_i32_1 = arith.constant 0 : i32
    return %c0_i32, %c0_i32_0 : i32, i32
  }
  func.func @transform_6(%arg0: i32) -> (i32, i32) {
    %c0_i32 = arith.constant 0 : i32
    %c0_i32_0 = arith.constant 0 : i32
    %c0_i32_1 = arith.constant 0 : i32
    return %c0_i32, %c0_i32_0 : i32, i32
  }
  func.func @transform_7(%arg0: i32) -> (i32, i32) {
    %c0_i32 = arith.constant 0 : i32
    %c0_i32_0 = arith.constant 0 : i32
    %c0_i32_1 = arith.constant 0 : i32
    return %c0_i32, %c0_i32_0 : i32, i32
  }
  func.func @transform_8(%arg0: i32) -> (i32, i32) {
    %c0_i32 = arith.constant 0 : i32
    %c0_i32_0 = arith.constant 0 : i32
    %c0_i32_1 = arith.constant 0 : i32
    return %c0_i32, %c0_i32_0 : i32, i32
  }
  func.func @transform_9(%arg0: i32) -> (i32, i32) {
    %c0_i32 = arith.constant 0 : i32
    %c0_i32_0 = arith.constant 0 : i32
    %c0_i32_1 = arith.constant 0 : i32
    return %c0_i32, %c0_i32_0 : i32, i32
  }
  func.func @transform_10(%arg0: i32) -> (i32, i32) {
    %c0_i32 = arith.constant 0 : i32
    %c0_i32_0 = arith.constant 0 : i32
    %c0_i32_1 = arith.constant 0 : i32
    return %c0_i32, %c0_i32_0 : i32, i32
  }
  func.func @transform_11(%arg0: i32) -> (i32, i32) {
    %c0_i32 = arith.constant 0 : i32
    %c0_i32_0 = arith.constant 0 : i32
    %c0_i32_1 = arith.constant 0 : i32
    return %c0_i32, %c0_i32_0 : i32, i32
  }
  func.func @transform_12(%arg0: i32) -> (i32, i32) {
    %c0_i32 = arith.constant 0 : i32
    %c0_i32_0 = arith.constant 0 : i32
    %c0_i32_1 = arith.constant 0 : i32
    return %c0_i32, %c0_i32_0 : i32, i32
  }
  func.func @transform_13(%arg0: i32) -> (i32, i32) {
    %c0_i32 = arith.constant 0 : i32
    %c0_i32_0 = arith.constant 0 : i32
    %c0_i32_1 = arith.constant 0 : i32
    return %c0_i32, %c0_i32_0 : i32, i32
  }
  func.func @transform_14(%arg0: i32) -> (i32, i32) {
    %c0_i32 = arith.constant 0 : i32
    %c0_i32_0 = arith.constant 0 : i32
    %c0_i32_1 = arith.constant 0 : i32
    return %c0_i32, %c0_i32_0 : i32, i32
  }
  func.func @transform_15(%arg0: i32) -> (i32, i32) {
    %c0_i32 = arith.constant 0 : i32
    %c0_i32_0 = arith.constant 0 : i32
    %c0_i32_1 = arith.constant 0 : i32
    return %c0_i32, %c0_i32_0 : i32, i32
  }
  func.func @transform_16(%arg0: i32) -> (i32, i32) {
    %c0_i32 = arith.constant 0 : i32
    %c0_i32_0 = arith.constant 0 : i32
    %c0_i32_1 = arith.constant 0 : i32
    return %c0_i32, %c0_i32_0 : i32, i32
  }
}

</mosaic_0001>

<bundles_post_ra>
// kernel: tpu_custom_call.1
= control target key start
LH: loop header
LB: loop body
LE: loop exit
PB: predicated region body
PF: predicated region fallthrough
CT: control target
= control target key end

     0   :  { %s4528_s0 = inlined_call_operand.vmem [shape: f32[64,32], index: 0, kind: input, shape index: {}]   ;;  %s4529_s1 = inlined_call_operand.vmem [shape: s32[8,1], index: 1, kind: input, shape index: {}]   ;;  %s4530_s2 = inlined_call_operand.vmem [shape: f32[32,128], index: 2, kind: input, shape index: {}]   ;;  %s4531_s3 = inlined_call_operand.vmem [shape: f32[32,128], index: 3, kind: input, shape index: {}]   ;;  %s4532_s4 = inlined_call_operand.vmem [shape: f32[1,128], index: 4, kind: input, shape index: {}]   ;;  %s4533_s5 = inlined_call_operand.vmem [shape: f32[32,128], index: 5, kind: input, shape index: {}]   ;;  %s4534_s6 = inlined_call_operand.hbm [shape: f32[32,128], index: 6, kind: input, shape index: {}]   ;;  %s4535_s7 = inlined_call_operand.vmem [shape: f32[1,128], index: 7, kind: input, shape index: {}]   ;;  %s4536_s8 = inlined_call_operand.hbm [shape: f32[32,32], index: 8, kind: input, shape index: {}]   ;;  %s4537_s9 = inlined_call_operand.vmem [shape: f32[1,32], index: 9, kind: input, shape index: {}]   ;;  %s4538_s10 = inlined_call_operand.hbm [shape: f32[32,64], index: 10, kind: input, shape index: {}]   ;;  %s4539_s11 = inlined_call_operand.vmem [shape: f32[1,64], index: 11, kind: input, shape index: {}]   ;;  %s4540_s12 = inlined_call_operand.vmem [shape: f32[64,32], index: 12, kind: input, shape index: {}]   ;;  %s4541_s13 = inlined_call_operand.vmem [shape: f32[1,32], index: 13, kind: input, shape index: {}]   ;;  %s4542_s14 = inlined_call_operand.vmem [shape: f32[32,256], index: 14, kind: input, shape index: {}]   ;;  %s4543_s15 = inlined_call_operand.vmem [shape: f32[1,256], index: 15, kind: input, shape index: {}]   ;;  %s4544_s16 = inlined_call_operand.hbm [shape: f32[8,256], index: 16, kind: output, shape index: {}]  }
   0x1   :  { %4546 = sst [smem:[#allocation12_spill]] %s4528_s0 }
   0x2   :  { %21 = vsyncpa [#allocation3], 0 }
   0x3   :  { %22 = vsyncpa [#allocation6], 0 }
   0x4   :  { %23 = vsyncpa [#allocation4], 0  ;;  %s3527_s21 = smov [#allocation5]   ;;  %s3528_s23 = smov [#allocation2]  }
   0x5   :  { %s55_s22 = sshll.u32 %s3527_s21, 4  ;;  %s41_s24 = sshll.u32 %s3528_s23, 4  ;;  %s56_s22 = int_to_ptr.vmem [resolvable:$true] %s55_s22  ;;  %s42_s24 = int_to_ptr.vmem [resolvable:$true] %s41_s24 }
   0x6   :  { %s3449_s25 = scalar_lea.vmem %s56_s22, 512  ;;  %p3454_p1 = scmp.lt.s32.totalorder %s56_s22, %s56_s22 }
   0x7   :  { %p3450_p0 = scmp.ne.s32.totalorder %s56_s22, %s3449_s25  ;;  %p3455_p2 = scmp.lt.s32.totalorder %s3449_s25, %s3449_s25 }
   0x9   :  { %p3456_p3 = por %p3455_p2, %p3454_p1 }
   0xb   :  { %p3457_p4 = pnand %p3456_p3, %p3450_p0 }
   0xd   :  { %3460 = shalt.err (!%p3457_p4)
}
   0xe   :  { %s3529_s26 = smov 128   ;;  %s3530_s27 = smov 8  }
   0xf   :  { %61 = dma.hbm_to_vmem [thread:$0]  %s4536_s8, 512, %s56_s22, [#allocation6], %s3529_s26, %s3529_s26, %s3530_s27  }
  0x10   :  { %s3469_s30 = scalar_lea.vmem %s42_s24, 512  ;;  %p3474_p6 = scmp.lt.s32.totalorder %s42_s24, %s42_s24 }
  0x11   :  { %p3470_p5 = scmp.ne.s32.totalorder %s42_s24, %s3469_s30  ;;  %p3475_p7 = scmp.lt.s32.totalorder %s3469_s30, %s3469_s30 }
  0x13   :  { %p3476_p8 = por %p3475_p7, %p3474_p6 }
  0x15   :  { %p3477_p9 = pnand %p3476_p8, %p3470_p5 }
  0x17   :  { %3480 = shalt.err (!%p3477_p9)
}
  0x18   :  { %47 = dma.hbm_to_vmem [thread:$0]  %s4534_s6, 512, %s42_s24, [#allocation3], %s3529_s26, %s3529_s26, %s3530_s27  }
  0x19   :  { %s3531_s18 = smov [#allocation7]  }
  0x1a   :  { %s69_s19 = sshll.u32 %s3531_s18, 4  ;;  %s70_s19 = int_to_ptr.vmem [resolvable:$true] %s69_s19 }
  0x1b   :  { %s3489_s20 = scalar_lea.vmem %s70_s19, 512  ;;  %p3494_p11 = scmp.lt.s32.totalorder %s70_s19, %s70_s19 }
  0x1c   :  { %p3490_p10 = scmp.ne.s32.totalorder %s70_s19, %s3489_s20  ;;  %p3495_p12 = scmp.lt.s32.totalorder %s3489_s20, %s3489_s20 }
  0x1e   :  { %p3496_p13 = por %p3495_p12, %p3494_p11 }
  0x20   :  { %p3497_p0 = pnand %p3496_p13, %p3490_p10 }
  0x22   :  { %3500 = shalt.err (!%p3497_p0)
}
  0x23   :  { %75 = dma.hbm_to_vmem [thread:$0]  %s4538_s10, 512, %s70_s19, [#allocation6], %s3529_s26, %s3529_s26, %s3530_s27  }
  0x24   :  { %3521 = dma.done.wait [#allocation3], 512  }
  0x25   :  { %3522 = vsyncadd [#allocation3], 4294966784 }
  0x26   :  { %3523 = dma.done.wait [#allocation6], 1024  }
  0x27   :  { %3524 = vsyncadd [#allocation6], 4294966272  ;;  %v3532_v0 = vmov 0.0   ;;  %vm3533_vm0 = vmmov 0   ;;  %v133_v1 = vld [vmem:[%s4530_s2 + $0x18] sm:$0xff]  ;;  %v132_v2 = vld [vmem:[%s4530_s2 + $0x10] sm:$0xff]  ;;  %v96_v14 = vlaneseq }
  0x28   :  { %3043 = vmatprep.subr.mxu1 %v3532_v0  ;;  %3051 = vmatprep.mubr.msk.f32.mxu1 %vm3533_vm0, %v3532_v0  ;;  %v3645_v3 = vld [vmem:[%s4531_s3 + $0x18] sm:$0xff]  ;;  %v3651_v4 = vld [vmem:[%s4531_s3 + $0x10] sm:$0xff]  ;;  %v131_v5 = vld [vmem:[%s4530_s2 + $0x8] sm:$0xff]  ;;  %s4547_s17 = sld [smem:[#allocation12_spill]]  ;;  %vm141_vm1 = vcmask 261120   ;;  %v3534_v12 = vmov 0  }
  0x29   :  { %3023 = vmatprep.subr.mxu0 %v133_v1  ;;  %3044 = vmatpush3.msra.mxu1 %v3645_v3  ;;  %v3664_v7 = vld [vmem:[%s4531_s3 + $0x8] sm:$0xff]  ;;  %v130_v8 = vld [vmem:[%s4530_s2] sm:$0xff]  ;;  %v97_v15 = vand.u32 127, %v96_v14  ;;  %v3535_v22 = vmov 0.5   ;;  %s3536_s26 = smov 64   ;;  %s3537_s27 = smov 32  }
  0x2a   :  { %3024 = vmatpush3.msra.mxu0 %v133_v1  ;;  %3045 = vmatprep.subr.mxu1 %v3532_v0  ;;  %v3674_v9 = vld [vmem:[%s4531_s3] sm:$0xff]  ;;  %v3721_v35 = vld [vmem:[%s4533_s5 + $0x18] sm:$0xff]  ;;  %v3733_v39 = vld [vmem:[#allocation2 + $0x10] sm:$0xff] }
  0x2b   :  { %3025 = vmatprep.subr.mxu0 %v132_v2  ;;  %3046 = vmatpush3.msra.mxu1 %v3651_v4  ;;  %v3691_v11 = vld [vmem:[%s4529_s1] sm:$0xff]  ;;  %vm98_vm3 = vcmp.ge.s32.totalorder %v97_v15, 64  ;;  %vm99_vm4 = vcmp.lt.s32.totalorder %v97_v15, 96  ;;  %v3726_v37 = vld [vmem:[#allocation2 + $0x18] sm:$0xff]  ;;  %v3738_v40 = vld [vmem:[%s4533_s5 + $0x10] sm:$0xff] }
  0x2c   :  { %3026 = vmatpush3.msra.mxu0 %v132_v2  ;;  %3047 = vmatprep.subr.mxu1 %v3532_v0  ;;  %vm271_vm2 = vcmp.gt.s32.totalorder %v3691_v11, 0  ;;  %vm100_vm5 = vmand %vm98_vm3, %vm99_vm4  ;;  %v3703_v18 = vld [vmem:[%s4532_s4] ss:$0 sm:$0xff]  ;;  %v3747_v42 = vld [vmem:[#allocation2 + $0x8] sm:$0xff]  ;;  %vm543_vm7 = vcmp.gt.s32.totalorder %v3691_v11, 1  ;;  %vm817_vm9 = vcmp.gt.s32.totalorder %v3691_v11, 2 }
  0x2d   :  { %3027 = vmatprep.subr.mxu0 %v131_v5  ;;  %3048 = vmatpush3.msra.mxu1 %v3664_v7  ;;  %v272_v13 = vsel %vm271_vm2, 1, %v3534_v12  ;;  %v3706_v23 = vsel %vm100_vm5, 1.0, %v3535_v22  ;;  %v3709_v27 = vsel %vm100_vm5, 0.0, %v3535_v22  ;;  %v3756_v44 = vld [vmem:[#allocation2] sm:$0xff]  ;;  %v3761_v45 = vld [vmem:[%s4533_s5 + $0x8] sm:$0xff]  ;;  %vm1091_vm11 = vcmp.gt.s32.totalorder %v3691_v11, 3 }
  0x2e   :  { %v122_v6 = vld [vmem:[%s4547_s17] sm:$0xff]  ;;  %3028 = vmatpush3.msra.mxu0 %v131_v5  ;;  %v123_v10 = vld [vmem:[%s4547_s17 + $0x8] sm:$0xff]  ;;  %3049 = vmatprep.subr.mxu1 %v3532_v0  ;;  %v124_v36 = vld [vmem:[%s4547_s17 + $0x10] sm:$0xff]  ;;  %vm1365_vm13 = vcmp.gt.s32.totalorder %v3691_v11, 4  ;;  %vm1639_vm15 = vcmp.gt.s32.totalorder %v3691_v11, 5 }
  0x2f   :  { %3031 = vmatprep.mubr.msk.f32.mxu0 %vm141_vm1, %v122_v6  ;;  %3029 = vmatprep.subr.mxu0 %v130_v8  ;;  %v125_v38 = vld [vmem:[%s4547_s17 + $0x18] sm:$0xff]  ;;  %v126_v41 = vld [vmem:[%s4547_s17 + $0x20] sm:$0xff]  ;;  %v127_v43 = vld [vmem:[%s4547_s17 + $0x28] sm:$0xff] }
  0x30   :  { %3030 = vmatpush3.msra.mxu0 %v130_v8  ;;  %3050 = vmatpush3.msra.mxu1 %v3674_v9  ;;  %v128_v46 = vld [vmem:[%s4547_s17 + $0x30] sm:$0xff]  ;;  %v129_v47 = vld [vmem:[%s4547_s17 + $0x38] sm:$0xff]  ;;  %v3782_v49 = vld [vmem:[%s4533_s5] sm:$0xff] }
  0x31   :  { %3032 = vmatmul.mubr.msk.f32.vlgmr.msra.gmra.mxu0 %vm141_vm1, %v123_v10  ;;  %3052 = vmatmul.mubr.f32.vlgmr.msra.gmra.mxu1 %v3532_v0  ;;  %v3848_v1 = vld [vmem:[%s4535_s7] ss:$0 sm:$0xff] }
  0x32   :  { %3065 = vmatprep.subr.mxu0 %v3532_v0  ;;  %3054 = vmatprep.subr.mxu1 %v3532_v0 }
  0x33   :  { %3062 = vmatprep.mubr.msk.f32.mxu1 %vm3533_vm0, %v3532_v0  ;;  %3360 = vset.pattern.permute.xlu1 %v3534_v12 }
  0x34   :  { %3361 = vset.pattern.permute.xlu0 %v3534_v12  ;;  %274 = vperm.xlu1 %3360, %v272_v13  }
  0x35   :  { %3066 = vmatpush3.msra.mxu0 %v3721_v35  ;;  %3034 = vmatprep.mubr.msk.f32.mxu0 %vm141_vm1, %v124_v36 }
  0x36   :  { %3055 = vmatpush3.msra.mxu1 %v3726_v37  ;;  %3035 = vmatmul.mubr.msk.f32.gmra.mxu0 %vm141_vm1, %v125_v38 }
  0x37   :  { %3056 = vmatprep.subr.mxu1 %v3532_v0  ;;  %3067 = vmatprep.subr.mxu0 %v3532_v0 }
  0x38   :  { %3057 = vmatpush3.msra.mxu1 %v3733_v39  ;;  %3068 = vmatpush3.msra.mxu0 %v3738_v40 }
  0x39   :  { %3058 = vmatprep.subr.mxu1 %v3532_v0  ;;  %3037 = vmatprep.mubr.msk.f32.mxu0 %vm141_vm1, %v126_v41 }
  0x3a   :  { %3059 = vmatpush3.msra.mxu1 %v3747_v42  ;;  %3038 = vmatmul.mubr.msk.f32.gmra.mxu0 %vm141_vm1, %v127_v43 }
  0x3b   :  { %3060 = vmatprep.subr.mxu1 %v3532_v0  ;;  %3069 = vmatprep.subr.mxu0 %v3532_v0 }
  0x3c   :  { %3061 = vmatpush3.msra.mxu1 %v3756_v44  ;;  %3070 = vmatpush3.msra.mxu0 %v3761_v45 }
  0x3d   :  { %3076 = vmatprep.subr.mxu1 %v3532_v0  ;;  %3040 = vmatprep.mubr.msk.f32.mxu0 %vm141_vm1, %v128_v46 }
  0x3e   :  { %3063 = vmatmul.mubr.f32.vlgmr.msra.gmra.mxu1 %v3532_v0  ;;  %3041 = vmatmul.mubr.msk.f32.gmra.mxu0 %vm141_vm1, %v129_v47 }
  0x3f   :  { %3077 = vmatpush3.msra.mxu1 %v3645_v3  ;;  %3071 = vmatprep.subr.mxu0 %v3532_v0 }
  0x40   :  { %3078 = vmatprep.subr.mxu1 %v3532_v0  ;;  %3072 = vmatpush3.msra.mxu0 %v3782_v49 }
  0x41   :  { %3079 = vmatpush3.msra.mxu1 %v3651_v4  ;;  %3073 = vmatprep.mubr.msk.f32.mxu0 %vm3533_vm0, %v3532_v0 }
  0x42   :  { %3080 = vmatprep.subr.mxu1 %v3532_v0  ;;  %3084 = vmatprep.mubr.msk.f32.mxu1 %vm3533_vm0, %v3532_v0 }
  0x43   :  { %3081 = vmatpush3.msra.mxu1 %v3664_v7  ;;  %3087 = vmatprep.subr.mxu0 %v3532_v0 }
  0x44   :  { %3082 = vmatprep.subr.mxu1 %v3532_v0 }
  0x45   :  { %3083 = vmatpush3.msra.mxu1 %v3674_v9 }
  0x46   :  { %3098 = vmatprep.subr.mxu1 %v3532_v0 }
  0xaf   :  { %v3800_v50 = vpop.permute.xlu1 %274 }
  0xb0   :  { %vm276_vm6 = vcmp.eq.s32.totalorder %v3800_v50, 1 }
  0xf1   :  { %v3698_v16 = vpop.f32.mrf.mxu0  ;;  %v346_v17 = vpop.f32.mrf.mxu1 }
  0xf2   :  { %v238_v63 = vadd.f32 %v3698_v16, %v3703_v18 }
  0xf3   :  { %v232_v19 = vpop.f32.mrf.mxu0  ;;  %v3053_v20 = vpop.f32.mrf.mxu1 }
  0xf4   :  { %v233_v21 = vadd.f32 %v3703_v18, %v232_v19 }
  0xf6   :  { %v350_v24 = vadd.f32 %v346_v17, %v233_v21  ;;  %v3831_v57 = vpop.f32.mrf.mxu0 }
  0xf8   :  { %v351_v25 = vmul.f32 %v350_v24, %v3706_v23  ;;  %v3833_v58 = vpop.f32.mrf.mxu0 }
  0xfa   :  { %3362 = vtanh.f32 %v351_v25  ;;  %v3835_v59 = vpop.f32.mrf.mxu0 }
  0xfc   :  { %v3837_v60 = vpop.f32.mrf.mxu0 }
  0xfe   :  { %v440_v54 = vpop.f32.mrf.mxu1  ;;  %v3839_v61 = vpop.f32.mrf.mxu0 }
 0x100   :  { %v3064_v55 = vpop.f32.mrf.mxu1  ;;  %v3841_v62 = vpop.f32.mrf.mxu0 }
 0x107   :  { %v3363_v26 = vpop.eup %3362 }
 0x108   :  { %v353_v28 = vmul.f32 %v3363_v26, %v3706_v23 }
 0x10a   :  { %v354_v29 = vadd.f32 %v353_v28, %v3709_v27 }
 0x10c   :  { %357 = vrot.lane.b32.xlu0 %v354_v29, %s3536_s26  ;;  %v355_v32 = vmul.f32 0.0, %v354_v29 }
 0x17e   :  { %v358_v30 = vpop.permute.xlu0 %357 }
 0x17f   :  { %v360_v31 = vmul.f32 %v358_v30, %v354_v29 }
 0x181   :  { %362 = vrot.lane.b32.xlu0 %v360_v31, %s3537_s27  ;;  %v544_v31 = vsel %vm543_vm7, 1, %v3534_v12 }
 0x1f3   :  { %v363_v33 = vpop.permute.xlu0 %362 }
 0x1f4   :  { %v3715_v34 = vadd.f32 %v363_v33, %v355_v32 }
 0x1f6   :  { %3364 = vtanh.f32 %v3715_v34  ;;  %v3866_v32 = vsel %vm276_vm6, %v3715_v34, 0.0 }
 0x203   :  { %v3365_v48 = vpop.eup %3364 }
 0x204   :  { %368 = vrot.lane.b32.xlu1 %v3365_v48, %s3536_s26 }
 0x276   :  { %v369_v51 = vpop.permute.xlu1 %368 }
 0x277   :  { %v371_v52 = vmul.f32 %v369_v51, %v354_v29 }
 0x279   :  { %v3805_v53 = vsel %vm276_vm6, %v371_v52, 0.0 }
 0x27a   :  { %445 = vrot.lane.b32.xlu0 %v3805_v53, %s3537_s27 }
 0x2ec   :  { %v446_v56 = vpop.permute.xlu0 %445 }
 0x2ed   :  { %3074 = vmatmul.mubr.msk.f32.vlgmr.msra.gmra.mxu0 %vm141_vm1, %v446_v56  ;;  %3085 = vmatmul.mubr.msk.f32.vlgmr.msra.gmra.mxu1 %vm141_vm1, %v446_v56 }
 0x2ee   :  { %3099 = vmatpush3.msra.mxu1 %v3721_v35  ;;  %3088 = vmatpush3.msra.mxu0 %v3726_v37 }
 0x2ef   :  { %3100 = vmatprep.subr.mxu1 %v3532_v0  ;;  %3089 = vmatprep.subr.mxu0 %v3532_v0 }
 0x2f0   :  { %3101 = vmatpush3.msra.mxu1 %v3738_v40  ;;  %3090 = vmatpush3.msra.mxu0 %v3733_v39 }
 0x2f1   :  { %3102 = vmatprep.subr.mxu1 %v3532_v0  ;;  %3091 = vmatprep.subr.mxu0 %v3532_v0 }
 0x2f2   :  { %3103 = vmatpush3.msra.mxu1 %v3761_v45  ;;  %3092 = vmatpush3.msra.mxu0 %v3747_v42 }
 0x2f3   :  { %3104 = vmatprep.subr.mxu1 %v3532_v0  ;;  %3093 = vmatprep.subr.mxu0 %v3532_v0 }
 0x2f4   :  { %3105 = vmatpush3.msra.mxu1 %v3782_v49  ;;  %3106 = vmatprep.mubr.msk.f32.mxu1 %vm3533_vm0, %v3532_v0 }
 0x2f5   :  { %3094 = vmatpush3.msra.mxu0 %v3756_v44  ;;  %3095 = vmatprep.mubr.msk.f32.mxu0 %vm3533_vm0, %v3532_v0 }
 0x2f6   :  { %3109 = vmatprep.subr.mxu0 %v3532_v0  ;;  %3120 = vmatprep.subr.mxu1 %v3532_v0 }
 0x3ad   :  { %v515_v2 = vpop.f32.mrf.mxu0  ;;  %v615_v5 = vpop.f32.mrf.mxu1 }
 0x3ae   :  { %v516_v6 = vadd.f32 %v515_v2, %v440_v54  ;;  %v619_v8 = vadd.f32 %v615_v5, %v238_v63 }
 0x3af   :  { %v3075_v10 = vpop.f32.mrf.mxu0  ;;  %v3086_v13 = vpop.f32.mrf.mxu1 }
 0x3b0   :  { %v519_v15 = vadd.f32 %v3848_v1, %v516_v6  ;;  %v620_v17 = vmul.f32 %v619_v8, %v3706_v23 }
 0x3b2   :  { %v520_v19 = vmul.f32 %v519_v15, %v3706_v23  ;;  %3366 = vtanh.f32 %v620_v17 }
 0x3b4   :  { %3368 = vtanh.f32 %v520_v19  ;;  %v243_v19 = vadd.f32 %v3703_v18, %v3833_v58 }
 0x3bf   :  { %v3367_v16 = vpop.eup %3366 }
 0x3c0   :  { %v622_v20 = vmul.f32 %v3367_v16, %v3706_v23 }
 0x3c1   :  { %v3369_v21 = vpop.eup %3368 }
 0x3c2   :  { %v623_v22 = vadd.f32 %v622_v20, %v3709_v27  ;;  %v522_v24 = vmul.f32 %v3369_v21, %v3706_v23 }
 0x3c4   :  { %626 = vrot.lane.b32.xlu0 %v623_v22, %s3536_s26  ;;  %v523_v25 = vadd.f32 %v522_v24, %v3709_v27  ;;  %v624_v33 = vmul.f32 %v623_v22, %v3866_v32 }
 0x3c6   :  { %526 = vrot.lane.b32.xlu1 %v523_v25, %s3536_s26  ;;  %v524_v41 = vmul.f32 0.0, %v523_v25 }
 0x436   :  { %v627_v26 = vpop.permute.xlu0 %626 }
 0x437   :  { %v629_v28 = vmul.f32 %v627_v26, %v623_v22 }
 0x438   :  { %v527_v29 = vpop.permute.xlu1 %526 }
 0x439   :  { %v529_v30 = vmul.f32 %v527_v29, %v523_v25  ;;  %631 = vrot.lane.b32.xlu0 %v629_v28, %s3537_s27 }
 0x43b   :  { %531 = vrot.lane.b32.xlu1 %v529_v30, %s3537_s27 }
 0x43f   :  { %546 = vperm.xlu1 %3360, %v544_v31  }
 0x4ab   :  { %v632_v36 = vpop.permute.xlu0 %631 }
 0x4ac   :  { %v3869_v38 = vadd.f32 %v632_v36, %v624_v33 }
 0x4ad   :  { %v532_v43 = vpop.permute.xlu1 %531 }
 0x4ae   :  { %3370 = vtanh.f32 %v3869_v38  ;;  %v3872_v46 = vadd.f32 %v532_v43, %v524_v41  ;;  %v818_v41 = vsel %vm817_vm9, 1, %v3534_v12 }
 0x4b0   :  { %3372 = vtanh.f32 %v3872_v46  ;;  %v3944_v43 = vsel %vm276_vm6, %v3872_v46, 0.0 }
 0x4ba   :  { %v3877_v34 = vpop.permute.xlu1 %546 }
 0x4bb   :  { %v3371_v47 = vpop.eup %3370  ;;  %vm548_vm8 = vcmp.eq.s32.totalorder %v3877_v34, 1 }
 0x4bc   :  { %637 = vrot.lane.b32.xlu1 %v3371_v47, %s3536_s26 }
 0x4bd   :  { %v3373_v48 = vpop.eup %3372 }
 0x4be   :  { %537 = vrot.lane.b32.xlu0 %v3373_v48, %s3536_s26 }
 0x52e   :  { %v638_v51 = vpop.permute.xlu1 %637 }
 0x52f   :  { %v640_v52 = vmul.f32 %v638_v51, %v623_v22 }
 0x530   :  { %v538_v54 = vpop.permute.xlu0 %537 }
 0x531   :  { %v540_v55 = vmul.f32 %v538_v54, %v523_v25  ;;  %v3883_v56 = vsel %vm548_vm8, %v640_v52, %v3805_v53  ;;  %v3954_v52 = vsel %vm548_vm8, %v3869_v38, %v3866_v32 }
 0x532   :  { %719 = vrot.lane.b32.xlu1 %v3883_v56, %s3537_s27 }
 0x533   :  { %v3889_v63 = vsel %vm276_vm6, %v540_v55, 0.0 }
 0x534   :  { %644 = vrot.lane.b32.xlu0 %v3889_v63, %s3537_s27 }
 0x5a4   :  { %v720_v2 = vpop.permute.xlu1 %719 }
 0x5a5   :  { %3107 = vmatmul.mubr.msk.f32.vlgmr.msra.gmra.mxu1 %vm141_vm1, %v720_v2 }
 0x5a6   :  { %v645_v5 = vpop.permute.xlu0 %644  ;;  %3121 = vmatpush3.msra.mxu1 %v3726_v37  ;;  %3128 = vmatprep.mubr.msk.f32.mxu1 %vm3533_vm0, %v3532_v0 }
 0x5a7   :  { %3096 = vmatmul.mubr.msk.f32.vlgmr.msra.gmra.mxu0 %vm141_vm1, %v645_v5  ;;  %3122 = vmatprep.subr.mxu1 %v3532_v0 }
 0x5a8   :  { %3110 = vmatpush3.msra.mxu0 %v3645_v3  ;;  %3117 = vmatprep.mubr.msk.f32.mxu0 %vm3533_vm0, %v3532_v0 }
 0x5a9   :  { %3111 = vmatprep.subr.mxu0 %v3532_v0  ;;  %3123 = vmatpush3.msra.mxu1 %v3733_v39 }
 0x5aa   :  { %3112 = vmatpush3.msra.mxu0 %v3651_v4  ;;  %3124 = vmatprep.subr.mxu1 %v3532_v0 }
 0x5ab   :  { %3113 = vmatprep.subr.mxu0 %v3532_v0  ;;  %3125 = vmatpush3.msra.mxu1 %v3747_v42 }
 0x5ac   :  { %3114 = vmatpush3.msra.mxu0 %v3664_v7  ;;  %3126 = vmatprep.subr.mxu1 %v3532_v0 }
 0x5ad   :  { %3115 = vmatprep.subr.mxu0 %v3532_v0  ;;  %3127 = vmatpush3.msra.mxu1 %v3756_v44 }
 0x5ae   :  { %3116 = vmatpush3.msra.mxu0 %v3674_v9  ;;  %3142 = vmatprep.subr.mxu1 %v3532_v0 }
 0x5af   :  { %3118 = vmatmul.mubr.msk.f32.vlgmr.msra.gmra.mxu0 %vm141_vm1, %v720_v2  ;;  %3131 = vmatprep.subr.mxu0 %v3532_v0 }
 0x5b0   :  { %3132 = vmatpush3.msra.mxu0 %v3721_v35  ;;  %3139 = vmatprep.mubr.msk.f32.mxu0 %vm3533_vm0, %v3532_v0 }
 0x5b1   :  { %3133 = vmatprep.subr.mxu0 %v3532_v0 }
 0x5b2   :  { %3134 = vmatpush3.msra.mxu0 %v3738_v40 }
 0x5b3   :  { %3135 = vmatprep.subr.mxu0 %v3532_v0 }
 0x5b4   :  { %3136 = vmatpush3.msra.mxu0 %v3761_v45 }
 0x5b5   :  { %3137 = vmatprep.subr.mxu0 %v3532_v0 }
 0x5b6   :  { %3138 = vmatpush3.msra.mxu0 %v3782_v49 }
 0x5b7   :  { %3153 = vmatprep.subr.mxu0 %v3532_v0 }
 0x665   :  { %v789_v53 = vpop.f32.mrf.mxu1 }
 0x667   :  { %v714_v6 = vpop.f32.mrf.mxu0  ;;  %v3108_v8 = vpop.f32.mrf.mxu1 }
 0x668   :  { %v790_v10 = vadd.f32 %v789_v53, %v714_v6 }
 0x669   :  { %v3097_v13 = vpop.f32.mrf.mxu0 }
 0x66a   :  { %v793_v15 = vadd.f32 %v3848_v1, %v790_v10 }
 0x66c   :  { %v794_v17 = vmul.f32 %v793_v15, %v3706_v23 }
 0x66e   :  { %3374 = vtanh.f32 %v794_v17 }
 0x66f   :  { %v889_v16 = vpop.f32.mrf.mxu0 }
 0x670   :  { %v893_v20 = vadd.f32 %v889_v16, %v243_v19  ;;  %v248_v19 = vadd.f32 %v3831_v57, %v3703_v18 }
 0x671   :  { %v3119_v21 = vpop.f32.mrf.mxu0 }
 0x672   :  { %v894_v22 = vmul.f32 %v893_v20, %v3706_v23 }
 0x674   :  { %3376 = vtanh.f32 %v894_v22 }
 0x67b   :  { %v3375_v24 = vpop.eup %3374 }
 0x67c   :  { %v796_v25 = vmul.f32 %v3375_v24, %v3706_v23 }
 0x67e   :  { %v797_v26 = vadd.f32 %v796_v25, %v3709_v27 }
 0x680   :  { %800 = vrot.lane.b32.xlu0 %v797_v26, %s3536_s26  ;;  %v798_v47 = vmul.f32 %v797_v26, %v3944_v43 }
 0x681   :  { %v3377_v28 = vpop.eup %3376 }
 0x682   :  { %v896_v29 = vmul.f32 %v3377_v28, %v3706_v23 }
 0x684   :  { %v897_v30 = vadd.f32 %v896_v29, %v3709_v27 }
 0x686   :  { %900 = vrot.lane.b32.xlu1 %v897_v30, %s3536_s26  ;;  %v898_v54 = vmul.f32 %v897_v30, %v3954_v52 }
 0x6f2   :  { %v801_v58 = vpop.permute.xlu0 %800 }
 0x6f3   :  { %v803_v31 = vmul.f32 %v801_v58, %v797_v26 }
 0x6f5   :  { %805 = vrot.lane.b32.xlu0 %v803_v31, %s3537_s27 }
 0x6f8   :  { %v901_v33 = vpop.permute.xlu1 %900 }
 0x6f9   :  { %v903_v36 = vmul.f32 %v901_v33, %v897_v30 }
 0x6fb   :  { %905 = vrot.lane.b32.xlu1 %v903_v36, %s3537_s27 }
 0x6ff   :  { %820 = vperm.xlu1 %3360, %v818_v41  }
 0x767   :  { %v806_v48 = vpop.permute.xlu0 %805 }
 0x768   :  { %v3947_v51 = vadd.f32 %v806_v48, %v798_v47 }
 0x76a   :  { %3378 = vtanh.f32 %v3947_v51 }
 0x76d   :  { %v906_v55 = vpop.permute.xlu1 %905 }
 0x76e   :  { %v3957_v2 = vadd.f32 %v906_v55, %v898_v54  ;;  %v1092_v54 = vsel %vm1091_vm11, 1, %v3534_v12  ;;  %v4031_v55 = vsel %vm548_vm8, %v3947_v51, %v3944_v43 }
 0x770   :  { %3380 = vtanh.f32 %v3957_v2 }
 0x777   :  { %v3379_v50 = vpop.eup %3378 }
 0x778   :  { %811 = vrot.lane.b32.xlu0 %v3379_v50, %s3536_s26 }
 0x77a   :  { %v3969_v38 = vpop.permute.xlu1 %820 }
 0x77b   :  { %vm822_vm10 = vcmp.eq.s32.totalorder %v3969_v38, 1 }
 0x77c   :  { %v4037_v50 = vsel %vm822_vm10, %v3957_v2, %v3954_v52 }
 0x77d   :  { %v3381_v46 = vpop.eup %3380 }
 0x77e   :  { %911 = vrot.lane.b32.xlu0 %v3381_v46, %s3536_s26 }
 0x7ea   :  { %v812_v5 = vpop.permute.xlu0 %811 }
 0x7eb   :  { %v814_v53 = vmul.f32 %v812_v5, %v797_v26 }
 0x7ed   :  { %v3965_v32 = vsel %vm548_vm8, %v814_v53, %v3889_v63 }
 0x7ee   :  { %918 = vrot.lane.b32.xlu1 %v3965_v32, %s3537_s27 }
 0x7f0   :  { %v912_v6 = vpop.permute.xlu0 %911 }
 0x7f1   :  { %v914_v8 = vmul.f32 %v912_v6, %v897_v30 }
 0x7f3   :  { %v3975_v10 = vsel %vm822_vm10, %v914_v8, %v3883_v56 }
 0x7f4   :  { %993 = vrot.lane.b32.xlu0 %v3975_v10, %s3537_s27 }
 0x860   :  { %v919_v13 = vpop.permute.xlu1 %918 }
 0x861   :  { %3129 = vmatmul.mubr.msk.f32.vlgmr.msra.gmra.mxu1 %vm141_vm1, %v919_v13 }
 0x862   :  { %3143 = vmatpush3.msra.mxu1 %v3645_v3  ;;  %3150 = vmatprep.mubr.msk.f32.mxu1 %vm3533_vm0, %v3532_v0 }
 0x863   :  { %3144 = vmatprep.subr.mxu1 %v3532_v0 }
 0x864   :  { %3145 = vmatpush3.msra.mxu1 %v3651_v4 }
 0x865   :  { %3146 = vmatprep.subr.mxu1 %v3532_v0 }
 0x866   :  { %3147 = vmatpush3.msra.mxu1 %v3664_v7  ;;  %v994_v56 = vpop.permute.xlu0 %993 }
 0x867   :  { %3140 = vmatmul.mubr.msk.f32.vlgmr.msra.gmra.mxu0 %vm141_vm1, %v994_v56  ;;  %3148 = vmatprep.subr.mxu1 %v3532_v0 }
 0x868   :  { %3149 = vmatpush3.msra.mxu1 %v3674_v9  ;;  %3154 = vmatpush3.msra.mxu0 %v3726_v37 }
 0x869   :  { %3151 = vmatmul.mubr.msk.f32.vlgmr.msra.gmra.mxu1 %vm141_vm1, %v994_v56  ;;  %3164 = vmatprep.subr.mxu1 %v3532_v0 }
 0x86a   :  { %3155 = vmatprep.subr.mxu0 %v3532_v0  ;;  %3165 = vmatpush3.msra.mxu1 %v3721_v35 }
 0x86b   :  { %3156 = vmatpush3.msra.mxu0 %v3733_v39  ;;  %3166 = vmatprep.subr.mxu1 %v3532_v0 }
 0x86c   :  { %3157 = vmatprep.subr.mxu0 %v3532_v0  ;;  %3167 = vmatpush3.msra.mxu1 %v3738_v40 }
 0x86d   :  { %3158 = vmatpush3.msra.mxu0 %v3747_v42  ;;  %3168 = vmatprep.subr.mxu1 %v3532_v0 }
 0x86e   :  { %3159 = vmatprep.subr.mxu0 %v3532_v0  ;;  %3169 = vmatpush3.msra.mxu1 %v3761_v45 }
 0x86f   :  { %3160 = vmatpush3.msra.mxu0 %v3756_v44  ;;  %3170 = vmatprep.subr.mxu1 %v3532_v0 }
 0x870   :  { %3161 = vmatprep.mubr.msk.f32.mxu0 %vm3533_vm0, %v3532_v0  ;;  %3171 = vmatpush3.msra.mxu1 %v3782_v49 }
 0x871   :  { %3172 = vmatprep.mubr.msk.f32.mxu1 %vm3533_vm0, %v3532_v0  ;;  %3175 = vmatprep.subr.mxu0 %v3532_v0 }
 0x872   :  { %3186 = vmatprep.subr.mxu1 %v3532_v0 }
 0x921   :  { %v988_v63 = vpop.f32.mrf.mxu1 }
 0x923   :  { %v3130_v15 = vpop.f32.mrf.mxu1 }
 0x927   :  { %v1063_v17 = vpop.f32.mrf.mxu0 }
 0x928   :  { %v1064_v16 = vadd.f32 %v1063_v17, %v988_v63 }
 0x929   :  { %v3141_v20 = vpop.f32.mrf.mxu0  ;;  %v1163_v21 = vpop.f32.mrf.mxu1 }
 0x92a   :  { %v1067_v22 = vadd.f32 %v3848_v1, %v1064_v16  ;;  %v1167_v24 = vadd.f32 %v1163_v21, %v248_v19 }
 0x92b   :  { %v3152_v25 = vpop.f32.mrf.mxu1 }
 0x92c   :  { %v1068_v26 = vmul.f32 %v1067_v22, %v3706_v23  ;;  %v1168_v28 = vmul.f32 %v1167_v24, %v3706_v23 }
 0x92e   :  { %3382 = vtanh.f32 %v1068_v26  ;;  %v253_v26 = vadd.f32 %v3703_v18, %v3837_v60 }
 0x92f   :  { %3384 = vtanh.f32 %v1168_v28 }
 0x93b   :  { %v3383_v29 = vpop.eup %3382 }
 0x93c   :  { %v3385_v30 = vpop.eup %3384  ;;  %v1070_v58 = vmul.f32 %v3383_v29, %v3706_v23 }
 0x93d   :  { %v1170_v31 = vmul.f32 %v3385_v30, %v3706_v23 }
 0x93e   :  { %v1071_v57 = vadd.f32 %v1070_v58, %v3709_v27 }
 0x93f   :  { %v1171_v33 = vadd.f32 %v1170_v31, %v3709_v27 }
 0x940   :  { %1074 = vrot.lane.b32.xlu1 %v1071_v57, %s3536_s26  ;;  %v1072_v46 = vmul.f32 %v1071_v57, %v4031_v55 }
 0x941   :  { %1174 = vrot.lane.b32.xlu0 %v1171_v33, %s3536_s26  ;;  %v1172_v5 = vmul.f32 %v1171_v33, %v4037_v50 }
 0x9b2   :  { %v1075_v36 = vpop.permute.xlu1 %1074 }
 0x9b3   :  { %v1175_v41 = vpop.permute.xlu0 %1174  ;;  %v1077_v47 = vmul.f32 %v1075_v36, %v1071_v57 }
 0x9b4   :  { %v1177_v48 = vmul.f32 %v1175_v41, %v1171_v33 }
 0x9b5   :  { %1079 = vrot.lane.b32.xlu1 %v1077_v47, %s3537_s27 }
 0x9b6   :  { %1179 = vrot.lane.b32.xlu0 %v1177_v48, %s3537_s27 }
 0x9b9   :  { %1094 = vperm.xlu1 %3360, %v1092_v54  }
 0xa27   :  { %v1080_v53 = vpop.permute.xlu1 %1079 }
 0xa28   :  { %v1180_v6 = vpop.permute.xlu0 %1179  ;;  %v4041_v8 = vadd.f32 %v1080_v53, %v1072_v46 }
 0xa29   :  { %v4043_v13 = vadd.f32 %v1180_v6, %v1172_v5  ;;  %v1366_v5 = vsel %vm1365_vm13, 1, %v3534_v12 }
 0xa2a   :  { %3386 = vtanh.f32 %v4041_v8  ;;  %v4118_v53 = vsel %vm822_vm10, %v4041_v8, %v4031_v55 }
 0xa2b   :  { %3388 = vtanh.f32 %v4043_v13 }
 0xa34   :  { %v4049_v51 = vpop.permute.xlu1 %1094 }
 0xa35   :  { %vm1096_vm12 = vcmp.eq.s32.totalorder %v4049_v51, 1 }
 0xa37   :  { %v3387_v34 = vpop.eup %3386 }
 0xa38   :  { %v3389_v43 = vpop.eup %3388  ;;  %1085 = vrot.lane.b32.xlu0 %v3387_v34, %s3536_s26 }
 0xa39   :  { %1185 = vrot.lane.b32.xlu1 %v3389_v43, %s3536_s26 }
 0xaaa   :  { %v1086_v52 = vpop.permute.xlu0 %1085 }
 0xaab   :  { %v1186_v2 = vpop.permute.xlu1 %1185  ;;  %v1088_v56 = vmul.f32 %v1086_v52, %v1071_v57  ;;  %v4128_v52 = vsel %vm1096_vm12, %v4043_v13, %v4037_v50 }
 0xaac   :  { %v1188_v63 = vmul.f32 %v1186_v2, %v1171_v33 }
 0xaad   :  { %v4055_v15 = vsel %vm822_vm10, %v1088_v56, %v3965_v32 }
 0xaae   :  { %v4060_v17 = vsel %vm1096_vm12, %v1188_v63, %v3975_v10  ;;  %1192 = vrot.lane.b32.xlu0 %v4055_v15, %s3537_s27 }
 0xaaf   :  { %1267 = vrot.lane.b32.xlu1 %v4060_v17, %s3537_s27 }
 0xb20   :  { %v1193_v19 = vpop.permute.xlu0 %1192 }
 0xb21   :  { %v1268_v16 = vpop.permute.xlu1 %1267  ;;  %3162 = vmatmul.mubr.msk.f32.vlgmr.msra.gmra.mxu0 %vm141_vm1, %v1193_v19 }
 0xb22   :  { %3173 = vmatmul.mubr.msk.f32.vlgmr.msra.gmra.mxu1 %vm141_vm1, %v1268_v16  ;;  %3176 = vmatpush3.msra.mxu0 %v3645_v3 }
 0xb23   :  { %3177 = vmatprep.subr.mxu0 %v3532_v0  ;;  %3183 = vmatprep.mubr.msk.f32.mxu0 %vm3533_vm0, %v3532_v0 }
 0xb24   :  { %3178 = vmatpush3.msra.mxu0 %v3651_v4  ;;  %3187 = vmatpush3.msra.mxu1 %v3726_v37 }
 0xb25   :  { %3179 = vmatprep.subr.mxu0 %v3532_v0  ;;  %3188 = vmatprep.subr.mxu1 %v3532_v0 }
 0xb26   :  { %3180 = vmatpush3.msra.mxu0 %v3664_v7  ;;  %3189 = vmatpush3.msra.mxu1 %v3733_v39 }
 0xb27   :  { %3181 = vmatprep.subr.mxu0 %v3532_v0  ;;  %3190 = vmatprep.subr.mxu1 %v3532_v0 }
 0xb28   :  { %3182 = vmatpush3.msra.mxu0 %v3674_v9  ;;  %3191 = vmatpush3.msra.mxu1 %v3747_v42 }
 0xb29   :  { %3184 = vmatmul.mubr.msk.f32.vlgmr.msra.gmra.mxu0 %vm141_vm1, %v1268_v16  ;;  %3192 = vmatprep.subr.mxu1 %v3532_v0 }
 0xb2a   :  { %3197 = vmatprep.subr.mxu0 %v3532_v0  ;;  %3193 = vmatpush3.msra.mxu1 %v3756_v44 }
 0xb2b   :  { %3198 = vmatpush3.msra.mxu0 %v3721_v35  ;;  %3194 = vmatprep.mubr.msk.f32.mxu1 %vm3533_vm0, %v3532_v0 }
 0xb2c   :  { %3199 = vmatprep.subr.mxu0 %v3532_v0  ;;  %3208 = vmatprep.subr.mxu1 %v3532_v0 }
 0xb2d   :  { %3200 = vmatpush3.msra.mxu0 %v3738_v40  ;;  %3205 = vmatprep.mubr.msk.f32.mxu0 %vm3533_vm0, %v3532_v0 }
 0xb2e   :  { %3201 = vmatprep.subr.mxu0 %v3532_v0 }
 0xb2f   :  { %3202 = vmatpush3.msra.mxu0 %v3761_v45 }
 0xb30   :  { %3203 = vmatprep.subr.mxu0 %v3532_v0 }
 0xb31   :  { %3204 = vmatpush3.msra.mxu0 %v3782_v49 }
 0xb32   :  { %3219 = vmatprep.subr.mxu0 %v3532_v0 }
 0xbe1   :  { %v1262_v32 = vpop.f32.mrf.mxu0 }
 0xbe2   :  { %v1337_v10 = vpop.f32.mrf.mxu1 }
 0xbe3   :  { %v1338_v20 = vadd.f32 %v1337_v10, %v1262_v32  ;;  %v3163_v21 = vpop.f32.mrf.mxu0 }
 0xbe4   :  { %v3174_v22 = vpop.f32.mrf.mxu1 }
 0xbe5   :  { %v1341_v24 = vadd.f32 %v3848_v1, %v1338_v20 }
 0xbe7   :  { %v1342_v25 = vmul.f32 %v1341_v24, %v3706_v23 }
 0xbe9   :  { %3390 = vtanh.f32 %v1342_v25  ;;  %v1437_v28 = vpop.f32.mrf.mxu0 }
 0xbea   :  { %v1441_v29 = vadd.f32 %v1437_v28, %v253_v26 }
 0xbeb   :  { %v3185_v30 = vpop.f32.mrf.mxu0 }
 0xbec   :  { %v1442_v58 = vmul.f32 %v1441_v29, %v3706_v23 }
 0xbee   :  { %3392 = vtanh.f32 %v1442_v58 }
 0xbf6   :  { %v3391_v31 = vpop.eup %3390 }
 0xbf7   :  { %v1344_v57 = vmul.f32 %v3391_v31, %v3706_v23 }
 0xbf9   :  { %v1345_v33 = vadd.f32 %v1344_v57, %v3709_v27 }
 0xbfb   :  { %v3393_v36 = vpop.eup %3392  ;;  %1348 = vrot.lane.b32.xlu0 %v1345_v33, %s3536_s26  ;;  %v1346_v6 = vmul.f32 %v1345_v33, %v4118_v53 }
 0xbfc   :  { %v1444_v41 = vmul.f32 %v3393_v36, %v3706_v23 }
 0xbfe   :  { %v1445_v47 = vadd.f32 %v1444_v41, %v3709_v27 }
 0xc00   :  { %1448 = vrot.lane.b32.xlu1 %v1445_v47, %s3536_s26  ;;  %v1446_v2 = vmul.f32 %v1445_v47, %v4128_v52 }
 0xc6d   :  { %v1349_v60 = vpop.permute.xlu0 %1348 }
 0xc6e   :  { %v1351_v48 = vmul.f32 %v1349_v60, %v1345_v33  ;;  %v1640_v60 = vsel %vm1639_vm15, 1, %v3534_v12 }
 0xc70   :  { %1353 = vrot.lane.b32.xlu0 %v1351_v48, %s3537_s27 }
 0xc72   :  { %v1449_v54 = vpop.permute.xlu1 %1448 }
 0xc73   :  { %v1451_v46 = vmul.f32 %v1449_v54, %v1445_v47 }
 0xc75   :  { %1453 = vrot.lane.b32.xlu1 %v1451_v46, %s3537_s27 }
 0xc79   :  { %1368 = vperm.xlu1 %3360, %v1366_v5  }
 0xce2   :  { %v1354_v34 = vpop.permute.xlu0 %1353 }
 0xce3   :  { %v4121_v43 = vadd.f32 %v1354_v34, %v1346_v6 }
 0xce5   :  { %3394 = vtanh.f32 %v4121_v43  ;;  %v4205_v48 = vsel %vm1096_vm12, %v4121_v43, %v4118_v53 }
 0xce7   :  { %v1454_v56 = vpop.permute.xlu1 %1453 }
 0xce8   :  { %v4131_v63 = vadd.f32 %v1454_v56, %v1446_v2 }
 0xcea   :  { %3396 = vtanh.f32 %v4131_v63 }
 0xcf2   :  { %v3395_v38 = vpop.eup %3394 }
 0xcf3   :  { %1359 = vrot.lane.b32.xlu0 %v3395_v38, %s3536_s26 }
 0xcf4   :  { %v4141_v13 = vpop.permute.xlu1 %1368 }
 0xcf5   :  { %vm1370_vm14 = vcmp.eq.s32.totalorder %v4141_v13, 1 }
 0xcf6   :  { %v4211_v54 = vsel %vm1370_vm14, %v4131_v63, %v4128_v52 }
 0xcf7   :  { %v3397_v55 = vpop.eup %3396 }
 0xcf8   :  { %1459 = vrot.lane.b32.xlu0 %v3397_v55, %s3536_s26 }
 0xd65   :  { %v1360_v8 = vpop.permute.xlu0 %1359 }
 0xd66   :  { %v1362_v19 = vmul.f32 %v1360_v8, %v1345_v33 }
 0xd68   :  { %v4139_v50 = vsel %vm1096_vm12, %v1362_v19, %v4055_v15 }
 0xd69   :  { %1466 = vrot.lane.b32.xlu1 %v4139_v50, %s3537_s27 }
 0xd6a   :  { %v1460_v16 = vpop.permute.xlu0 %1459 }
 0xd6b   :  { %v1462_v32 = vmul.f32 %v1460_v16, %v1445_v47 }
 0xd6d   :  { %v4149_v10 = vsel %vm1370_vm14, %v1462_v32, %v4060_v17  ;;  %v258_v17 = vadd.f32 %v3835_v59, %v3703_v18  ;;  %v4254_v32 = vld [vmem:[%s4531_s3 + $0x10] sm:$0xff] }
 0xd6e   :  { %1541 = vrot.lane.b32.xlu0 %v4149_v10, %s3537_s27 }
 0xddb   :  { %v1467_v20 = vpop.permute.xlu1 %1466 }
 0xddc   :  { %3195 = vmatmul.mubr.msk.f32.vlgmr.msra.gmra.mxu1 %vm141_vm1, %v1467_v20 }
 0xddd   :  { %3209 = vmatpush3.msra.mxu1 %v3645_v3  ;;  %3216 = vmatprep.mubr.msk.f32.mxu1 %vm3533_vm0, %v3532_v0 }
 0xdde   :  { %3210 = vmatprep.subr.mxu1 %v3532_v0 }
 0xddf   :  { %3211 = vmatpush3.msra.mxu1 %v3651_v4 }
 0xde0   :  { %3212 = vmatprep.subr.mxu1 %v3532_v0  ;;  %v1542_v15 = vpop.permute.xlu0 %1541 }
 0xde1   :  { %3213 = vmatpush3.msra.mxu1 %v3664_v7  ;;  %3206 = vmatmul.mubr.msk.f32.vlgmr.msra.gmra.mxu0 %vm141_vm1, %v1542_v15 }
 0xde2   :  { %3214 = vmatprep.subr.mxu1 %v3532_v0  ;;  %3220 = vmatpush3.msra.mxu0 %v3726_v37 }
 0xde3   :  { %3215 = vmatpush3.msra.mxu1 %v3674_v9  ;;  %3221 = vmatprep.subr.mxu0 %v3532_v0 }
 0xde4   :  { %3217 = vmatmul.mubr.msk.f32.vlgmr.msra.gmra.mxu1 %vm141_vm1, %v1542_v15  ;;  %3230 = vmatprep.subr.mxu1 %v3532_v0 }
 0xde5   :  { %3231 = vmatpush3.msra.mxu1 %v3721_v35  ;;  %3222 = vmatpush3.msra.mxu0 %v3733_v39 }
 0xde6   :  { %3232 = vmatprep.subr.mxu1 %v3532_v0  ;;  %3223 = vmatprep.subr.mxu0 %v3532_v0 }
 0xde7   :  { %3233 = vmatpush3.msra.mxu1 %v3738_v40  ;;  %3224 = vmatpush3.msra.mxu0 %v3747_v42 }
 0xde8   :  { %3234 = vmatprep.subr.mxu1 %v3532_v0  ;;  %3225 = vmatprep.subr.mxu0 %v3532_v0 }
 0xde9   :  { %3235 = vmatpush3.msra.mxu1 %v3761_v45  ;;  %3226 = vmatpush3.msra.mxu0 %v3756_v44 }
 0xdea   :  { %3236 = vmatprep.subr.mxu1 %v3532_v0  ;;  %3227 = vmatprep.mubr.msk.f32.mxu0 %vm3533_vm0, %v3532_v0 }
 0xdeb   :  { %3237 = vmatpush3.msra.mxu1 %v3782_v49  ;;  %3238 = vmatprep.mubr.msk.f32.mxu1 %vm3533_vm0, %v3532_v0 }
 0xdec   :  { %3241 = vmatprep.subr.mxu0 %v3532_v0  ;;  %3252 = vmatprep.subr.mxu1 %v3532_v0 }
 0xe9c   :  { %v1536_v3 = vpop.f32.mrf.mxu1 }
 0xe9e   :  { %v3196_v4 = vpop.f32.mrf.mxu1 }
 0xea1   :  { %v1611_v7 = vpop.f32.mrf.mxu0 }
 0xea2   :  { %v1612_v9 = vadd.f32 %v1611_v7, %v1536_v3  ;;  %v4298_v3 = vld [vmem:[%s4532_s4] ss:$0 sm:$0xff] }
 0xea3   :  { %v3207_v21 = vpop.f32.mrf.mxu0 }
 0xea4   :  { %v1615_v22 = vadd.f32 %v3848_v1, %v1612_v9  ;;  %v1711_v24 = vpop.f32.mrf.mxu1 }
 0xea5   :  { %v1715_v25 = vadd.f32 %v1711_v24, %v258_v17 }
 0xea6   :  { %v1616_v26 = vmul.f32 %v1615_v22, %v3706_v23  ;;  %v3218_v28 = vpop.f32.mrf.mxu1 }
 0xea7   :  { %v1716_v29 = vmul.f32 %v1715_v25, %v3706_v23 }
 0xea8   :  { %3398 = vtanh.f32 %v1616_v26 }
 0xea9   :  { %3400 = vtanh.f32 %v1716_v29 }
 0xeb5   :  { %v3399_v30 = vpop.eup %3398 }
 0xeb6   :  { %v3401_v58 = vpop.eup %3400  ;;  %v1618_v31 = vmul.f32 %v3399_v30, %v3706_v23  ;;  %v4313_v30 = vld [vmem:[%s4529_s1] sm:$0xff] }
 0xeb7   :  { %v1718_v57 = vmul.f32 %v3401_v58, %v3706_v23  ;;  %vm1913_vm3 = vcmp.gt.s32.totalorder %v4313_v30, 6  ;;  %vm2187_vm5 = vcmp.gt.s32.totalorder %v4313_v30, 7 }
 0xeb8   :  { %v1619_v18 = vadd.f32 %v1618_v31, %v3709_v27  ;;  %v1914_v58 = vsel %vm1913_vm3, 1, %v3534_v12 }
 0xeb9   :  { %v1719_v59 = vadd.f32 %v1718_v57, %v3709_v27 }
 0xeba   :  { %1622 = vrot.lane.b32.xlu1 %v1619_v18, %s3536_s26  ;;  %v1620_v11 = vmul.f32 %v1619_v18, %v4205_v48 }
 0xebb   :  { %1722 = vrot.lane.b32.xlu0 %v1719_v59, %s3536_s26  ;;  %v1720_v46 = vmul.f32 %v1719_v59, %v4211_v54 }
 0xf2c   :  { %v1623_v33 = vpop.permute.xlu1 %1622 }
 0xf2d   :  { %v1723_v36 = vpop.permute.xlu0 %1722  ;;  %v1625_v41 = vmul.f32 %v1623_v33, %v1619_v18 }
 0xf2e   :  { %v1725_v47 = vmul.f32 %v1723_v36, %v1719_v59 }
 0xf2f   :  { %1627 = vrot.lane.b32.xlu1 %v1625_v41, %s3537_s27 }
 0xf30   :  { %1727 = vrot.lane.b32.xlu0 %v1725_v47, %s3537_s27 }
 0xf33   :  { %1642 = vperm.xlu1 %3360, %v1640_v60  }
 0xfa1   :  { %v1628_v5 = vpop.permute.xlu1 %1627 }
 0xfa2   :  { %v1728_v6 = vpop.permute.xlu0 %1727  ;;  %v4215_v34 = vadd.f32 %v1628_v5, %v1620_v11 }
 0xfa3   :  { %v4217_v2 = vadd.f32 %v1728_v6, %v1720_v46 }
 0xfa4   :  { %3402 = vtanh.f32 %v4215_v34  ;;  %v4322_v31 = vsel %vm1370_vm14, %v4215_v34, %v4205_v48 }
 0xfa5   :  { %3404 = vtanh.f32 %v4217_v2 }
 0xfae   :  { %v4223_v43 = vpop.permute.xlu1 %1642 }
 0xfaf   :  { %vm1644_vm2 = vcmp.eq.s32.totalorder %v4223_v43, 1 }
 0xfb0   :  { %v4332_v33 = vsel %vm1644_vm2, %v4217_v2, %v4211_v54 }
 0xfb1   :  { %v3403_v51 = vpop.eup %3402 }
 0xfb2   :  { %v3405_v53 = vpop.eup %3404  ;;  %1633 = vrot.lane.b32.xlu0 %v3403_v51, %s3536_s26 }
 0xfb3   :  { %1733 = vrot.lane.b32.xlu1 %v3405_v53, %s3536_s26  ;;  %v3432_v53 = vld [vmem:[#allocation2 + $0x18] sm:$0xff] }
0x1024   :  { %v1634_v52 = vpop.permute.xlu0 %1633 }
0x1025   :  { %v1734_v56 = vpop.permute.xlu1 %1733  ;;  %v1636_v63 = vmul.f32 %v1634_v52, %v1619_v18  ;;  %v3433_v52 = vld [vmem:[%s4533_s5 + $0x18] sm:$0xff] }
0x1026   :  { %v1736_v38 = vmul.f32 %v1734_v56, %v1719_v59  ;;  %v3434_v56 = vld [vmem:[#allocation2 + $0x10] sm:$0xff] }
0x1027   :  { %v4229_v55 = vsel %vm1370_vm14, %v1636_v63, %v4139_v50  ;;  %v4245_v50 = vld [vmem:[%s4531_s3 + $0x18] sm:$0xff]  ;;  %v3435_v63 = vld [vmem:[%s4533_s5 + $0x10] sm:$0xff] }
0x1028   :  { %v4234_v8 = vsel %vm1644_vm2, %v1736_v38, %v4149_v10  ;;  %1740 = vrot.lane.b32.xlu0 %v4229_v55, %s3537_s27  ;;  %v4263_v10 = vld [vmem:[%s4531_s3 + $0x8] sm:$0xff] }
0x1029   :  { %1815 = vrot.lane.b32.xlu1 %v4234_v8, %s3537_s27  ;;  %v3436_v38 = vld [vmem:[#allocation2 + $0x8] sm:$0xff] }
0x109a   :  { %v1741_v19 = vpop.permute.xlu0 %1740 }
0x109b   :  { %v1816_v16 = vpop.permute.xlu1 %1815  ;;  %3228 = vmatmul.mubr.msk.f32.vlgmr.msra.gmra.mxu0 %vm141_vm1, %v1741_v19  ;;  %v3439_v19 = vld [vmem:[%s4533_s5] sm:$0xff] }
0x109c   :  { %3239 = vmatmul.mubr.msk.f32.vlgmr.msra.gmra.mxu1 %vm141_vm1, %v1816_v16  ;;  %3242 = vmatpush3.msra.mxu0 %v4245_v50 }
0x109d   :  { %3243 = vmatprep.subr.mxu0 %v3532_v0  ;;  %3249 = vmatprep.mubr.msk.f32.mxu0 %vm3533_vm0, %v3532_v0 }
0x109e   :  { %3244 = vmatpush3.msra.mxu0 %v4254_v32  ;;  %3253 = vmatpush3.msra.mxu1 %v3726_v37  ;;  %v4272_v37 = vld [vmem:[%s4531_s3] sm:$0xff] }
0x109f   :  { %3245 = vmatprep.subr.mxu0 %v3532_v0  ;;  %3254 = vmatprep.subr.mxu1 %v3532_v0 }
0x10a0   :  { %3246 = vmatpush3.msra.mxu0 %v4263_v10  ;;  %3255 = vmatpush3.msra.mxu1 %v3733_v39 }
0x10a1   :  { %3247 = vmatprep.subr.mxu0 %v3532_v0  ;;  %3256 = vmatprep.subr.mxu1 %v3532_v0 }
0x10a2   :  { %3248 = vmatpush3.msra.mxu0 %v4272_v37  ;;  %3257 = vmatpush3.msra.mxu1 %v3747_v42 }
0x10a3   :  { %3250 = vmatmul.mubr.msk.f32.vlgmr.msra.gmra.mxu0 %vm141_vm1, %v1816_v16  ;;  %3258 = vmatprep.subr.mxu1 %v3532_v0 }
0x10a4   :  { %3263 = vmatprep.subr.mxu0 %v3532_v0  ;;  %3259 = vmatpush3.msra.mxu1 %v3756_v44 }
0x10a5   :  { %3264 = vmatpush3.msra.mxu0 %v3721_v35  ;;  %3260 = vmatprep.mubr.msk.f32.mxu1 %vm3533_vm0, %v3532_v0 }
0x10a6   :  { %3265 = vmatprep.subr.mxu0 %v3532_v0  ;;  %3274 = vmatprep.subr.mxu1 %v3532_v0 }
0x10a7   :  { %3266 = vmatpush3.msra.mxu0 %v3738_v40  ;;  %3271 = vmatprep.mubr.msk.f32.mxu0 %vm3533_vm0, %v3532_v0 }
0x10a8   :  { %3267 = vmatprep.subr.mxu0 %v3532_v0 }
0x10a9   :  { %3268 = vmatpush3.msra.mxu0 %v3761_v45  ;;  %v263_v45 = vadd.f32 %v4298_v3, %v3841_v62 }
0x10aa   :  { %3269 = vmatprep.subr.mxu0 %v3532_v0 }
0x10ab   :  { %3270 = vmatpush3.msra.mxu0 %v3782_v49 }
0x10ac   :  { %3285 = vmatprep.subr.mxu0 %v3532_v0 }
0x115b   :  { %v1810_v35 = vpop.f32.mrf.mxu0 }
0x115c   :  { %v1885_v39 = vpop.f32.mrf.mxu1 }
0x115d   :  { %v1886_v42 = vadd.f32 %v1885_v39, %v1810_v35  ;;  %v3229_v44 = vpop.f32.mrf.mxu0  ;;  %v3440_v39 = vld [vmem:[%s4535_s7] ss:$0 sm:$0xff] }
0x115e   :  { %v3240_v20 = vpop.f32.mrf.mxu1 }
0x115f   :  { %v1889_v40 = vadd.f32 %v3848_v1, %v1886_v42 }
0x1161   :  { %v1890_v15 = vmul.f32 %v1889_v40, %v3706_v23 }
0x1163   :  { %3406 = vtanh.f32 %v1890_v15  ;;  %v1985_v49 = vpop.f32.mrf.mxu0 }
0x1164   :  { %v1989_v4 = vadd.f32 %v1985_v49, %v263_v45 }
0x1165   :  { %v3251_v7 = vpop.f32.mrf.mxu0 }
0x1166   :  { %v1990_v9 = vmul.f32 %v1989_v4, %v3706_v23 }
0x1168   :  { %3408 = vtanh.f32 %v1990_v9 }
0x1170   :  { %v3407_v17 = vpop.eup %3406 }
0x1171   :  { %v1892_v1 = vmul.f32 %v3407_v17, %v3706_v23 }
0x1173   :  { %v1893_v21 = vadd.f32 %v1892_v1, %v3709_v27 }
0x1175   :  { %v3409_v22 = vpop.eup %3408  ;;  %1896 = vrot.lane.b32.xlu0 %v1893_v21, %s3536_s26  ;;  %v1894_v57 = vmul.f32 %v1893_v21, %v4322_v31 }
0x1176   :  { %v1992_v24 = vmul.f32 %v3409_v22, %v3706_v23 }
0x1178   :  { %v1993_v25 = vadd.f32 %v1992_v24, %v3709_v27  ;;  %v2188_v24 = vsel %vm2187_vm5, 1, %v3534_v12 }
0x117a   :  { %1996 = vrot.lane.b32.xlu1 %v1993_v25, %s3536_s26  ;;  %v1994_v36 = vmul.f32 %v1993_v25, %v4332_v33 }
0x11e7   :  { %v1897_v62 = vpop.permute.xlu0 %1896 }
0x11e8   :  { %v1899_v26 = vmul.f32 %v1897_v62, %v1893_v21 }
0x11ea   :  { %1901 = vrot.lane.b32.xlu0 %v1899_v26, %s3537_s27 }
0x11ec   :  { %v1997_v28 = vpop.permute.xlu1 %1996 }
0x11ed   :  { %v1999_v29 = vmul.f32 %v1997_v28, %v1993_v25 }
0x11ef   :  { %2001 = vrot.lane.b32.xlu1 %v1999_v29, %s3537_s27 }
0x11f3   :  { %1916 = vperm.xlu1 %3360, %v1914_v58  }
0x125c   :  { %v1902_v18 = vpop.permute.xlu0 %1901 }
0x125d   :  { %v4325_v59 = vadd.f32 %v1902_v18, %v1894_v57 }
0x125f   :  { %3410 = vtanh.f32 %v4325_v59 }
0x1261   :  { %v2002_v41 = vpop.permute.xlu1 %2001 }
0x1262   :  { %v4335_v47 = vadd.f32 %v2002_v41, %v1994_v36 }
0x1264   :  { %3412 = vtanh.f32 %v4335_v47 }
0x126c   :  { %v3411_v13 = vpop.eup %3410 }
0x126d   :  { %1907 = vrot.lane.b32.xlu0 %v3411_v13, %s3536_s26 }
0x126e   :  { %v4345_v46 = vpop.permute.xlu1 %1916 }
0x126f   :  { %vm1918_vm4 = vcmp.eq.s32.totalorder %v4345_v46, 1 }
0x1270   :  { %v2012_v62 = vsel %vm1918_vm4, %v4335_v47, %v4332_v33 }
0x1271   :  { %v3413_v60 = vpop.eup %3412 }
0x1272   :  { %2007 = vrot.lane.b32.xlu0 %v3413_v60, %s3536_s26 }
0x12df   :  { %v1908_v48 = vpop.permute.xlu0 %1907 }
0x12e0   :  { %v1910_v11 = vmul.f32 %v1908_v48, %v1893_v21 }
0x12e2   :  { %v4343_v54 = vsel %vm1644_vm2, %v1910_v11, %v4229_v55  ;;  %v3437_v55 = vld [vmem:[%s4533_s5 + $0x8] sm:$0xff] }
0x12e3   :  { %2014 = vrot.lane.b32.xlu1 %v4343_v54, %s3537_s27 }
0x12e4   :  { %v2008_v5 = vpop.permute.xlu0 %2007 }
0x12e5   :  { %v2010_v6 = vmul.f32 %v2008_v5, %v1993_v25  ;;  %v1912_v25 = vsel %vm1644_vm2, %v4325_v59, %v4322_v31 }
0x12e7   :  { %v4353_v34 = vsel %vm1918_vm4, %v2010_v6, %v4234_v8  ;;  %v3438_v8 = vld [vmem:[#allocation2] sm:$0xff] }
0x12e8   :  { %2089 = vrot.lane.b32.xlu0 %v4353_v34, %s3537_s27 }
0x1355   :  { %v2015_v2 = vpop.permute.xlu1 %2014 }
0x1356   :  { %3261 = vmatmul.mubr.msk.f32.vlgmr.msra.gmra.mxu1 %vm141_vm1, %v2015_v2 }
0x1357   :  { %3275 = vmatpush3.msra.mxu1 %v4245_v50  ;;  %3282 = vmatprep.mubr.msk.f32.mxu1 %vm3533_vm0, %v3532_v0 }
0x1358   :  { %3276 = vmatprep.subr.mxu1 %v3532_v0 }
0x1359   :  { %3277 = vmatpush3.msra.mxu1 %v4254_v32 }
0x135a   :  { %3278 = vmatprep.subr.mxu1 %v3532_v0  ;;  %v2090_v51 = vpop.permute.xlu0 %2089 }
0x135b   :  { %3279 = vmatpush3.msra.mxu1 %v4263_v10  ;;  %3272 = vmatmul.mubr.msk.f32.vlgmr.msra.gmra.mxu0 %vm141_vm1, %v2090_v51 }
0x135c   :  { %3280 = vmatprep.subr.mxu1 %v3532_v0  ;;  %3286 = vmatpush3.msra.mxu0 %v3432_v53 }
0x135d   :  { %3281 = vmatpush3.msra.mxu1 %v4272_v37  ;;  %3287 = vmatprep.subr.mxu0 %v3532_v0  ;;  %v268_v37 = vadd.f32 %v4298_v3, %v3839_v61 }
0x135e   :  { %3283 = vmatmul.mubr.msk.f32.vlgmr.msra.gmra.mxu1 %vm141_vm1, %v2090_v51  ;;  %3296 = vmatprep.subr.mxu1 %v3532_v0 }
0x135f   :  { %3297 = vmatpush3.msra.mxu1 %v3433_v52  ;;  %3288 = vmatpush3.msra.mxu0 %v3434_v56 }
0x1360   :  { %3298 = vmatprep.subr.mxu1 %v3532_v0  ;;  %3289 = vmatprep.subr.mxu0 %v3532_v0 }
0x1361   :  { %3299 = vmatpush3.msra.mxu1 %v3435_v63  ;;  %3290 = vmatpush3.msra.mxu0 %v3436_v38 }
0x1362   :  { %3300 = vmatprep.subr.mxu1 %v3532_v0  ;;  %3291 = vmatprep.subr.mxu0 %v3532_v0 }
0x1363   :  { %3301 = vmatpush3.msra.mxu1 %v3437_v55  ;;  %3292 = vmatpush3.msra.mxu0 %v3438_v8 }
0x1364   :  { %3302 = vmatprep.subr.mxu1 %v3532_v0  ;;  %3293 = vmatprep.mubr.msk.f32.mxu0 %vm3533_vm0, %v3532_v0 }
0x1365   :  { %3303 = vmatpush3.msra.mxu1 %v3439_v19  ;;  %3304 = vmatprep.mubr.msk.f32.mxu1 %vm3533_vm0, %v3532_v0 }
0x1366   :  { %3307 = vmatprep.subr.mxu0 %v3532_v0  ;;  %3318 = vmatprep.subr.mxu1 %v3532_v0 }
0x1416   :  { %v2084_v16 = vpop.f32.mrf.mxu1 }
0x1418   :  { %v3262_v50 = vpop.f32.mrf.mxu1 }
0x1419   :  { %v2461_v50 = vld [vmem:[#allocation5 + $0x10] sm:$0xff] }
0x141b   :  { %v2159_v32 = vpop.f32.mrf.mxu0 }
0x141c   :  { %v2160_v10 = vadd.f32 %v2159_v32, %v2084_v16  ;;  %v2462_v16 = vld [vmem:[#allocation5 + $0x18] sm:$0xff] }
0x141d   :  { %v3273_v35 = vpop.f32.mrf.mxu0  ;;  %v2549_v32 = vld [vmem:[#allocation7 + $0x18] sm:$0xff] }
0x141e   :  { %v2163_v42 = vadd.f32 %v3440_v39, %v2160_v10  ;;  %v2259_v44 = vpop.f32.mrf.mxu1 }
0x141f   :  { %v2263_v20 = vadd.f32 %v2259_v44, %v268_v37  ;;  %v2547_v44 = vld [vmem:[#allocation7 + $0x8] sm:$0xff] }
0x1420   :  { %v2164_v40 = vmul.f32 %v2163_v42, %v3706_v23  ;;  %v3284_v15 = vpop.f32.mrf.mxu1  ;;  %v2548_v42 = vld [vmem:[#allocation7 + $0x10] sm:$0xff] }
0x1421   :  { %v2264_v45 = vmul.f32 %v2263_v20, %v3706_v23  ;;  %v2546_v20 = vld [vmem:[#allocation7] sm:$0xff]  ;;  %v2637_v15 = vld [vmem:[%s4540_s12 + $0x30] sm:$0xff] }
0x1422   :  { %3414 = vtanh.f32 %v2164_v40  ;;  %v2638_v40 = vld [vmem:[%s4540_s12 + $0x38] sm:$0xff] }
0x1423   :  { %3416 = vtanh.f32 %v2264_v45  ;;  %v2636_v45 = vld [vmem:[%s4540_s12 + $0x28] sm:$0xff] }
0x142f   :  { %v3415_v49 = vpop.eup %3414 }
0x1430   :  { %v3417_v4 = vpop.eup %3416  ;;  %v2166_v7 = vmul.f32 %v3415_v49, %v3706_v23  ;;  %v2635_v49 = vld [vmem:[%s4540_s12 + $0x20] sm:$0xff] }
0x1431   :  { %v2266_v61 = vmul.f32 %v3417_v4, %v3706_v23  ;;  %v2634_v4 = vld [vmem:[%s4540_s12 + $0x18] sm:$0xff] }
0x1432   :  { %v2167_v3 = vadd.f32 %v2166_v7, %v3709_v27  ;;  %v2865_v7 = vld [vmem:[%s4537_s9] ss:$0 sm:$0xff] }
0x1433   :  { %v2267_v9 = vadd.f32 %v2266_v61, %v3709_v27 }
0x1434   :  { %2170 = vrot.lane.b32.xlu1 %v2167_v3, %s3536_s26  ;;  %v2168_v26 = vmul.f32 %v2167_v3, %v1912_v25 }
0x1435   :  { %2270 = vrot.lane.b32.xlu0 %v2267_v9, %s3536_s26  ;;  %v2268_v28 = vmul.f32 %v2267_v9, %v2012_v62  ;;  %v2726_v62 = vld [vmem:[%s4542_s14 + $0x28] sm:$0xff] }
0x14a6   :  { %v2171_v17 = vpop.permute.xlu1 %2170 }
0x14a7   :  { %v2271_v1 = vpop.permute.xlu0 %2270  ;;  %v2173_v21 = vmul.f32 %v2171_v17, %v2167_v3 }
0x14a8   :  { %v2273_v22 = vmul.f32 %v2271_v1, %v2267_v9  ;;  %v2633_v1 = vld [vmem:[%s4540_s12 + $0x10] sm:$0xff] }
0x14a9   :  { %2175 = vrot.lane.b32.xlu1 %v2173_v21, %s3537_s27  ;;  %v2632_v21 = vld [vmem:[%s4540_s12 + $0x8] sm:$0xff] }
0x14aa   :  { %2275 = vrot.lane.b32.xlu0 %v2273_v22, %s3537_s27  ;;  %v2631_v22 = vld [vmem:[%s4540_s12] sm:$0xff] }
0x14ad   :  { %2190 = vperm.xlu1 %3360, %v2188_v24   ;;  %v2728_v24 = vld [vmem:[%s4542_s14 + $0x38] sm:$0xff] }
0x151b   :  { %v2176_v29 = vpop.permute.xlu1 %2175 }
0x151c   :  { %v2276_v30 = vpop.permute.xlu0 %2275  ;;  %v2178_v58 = vadd.f32 %v2176_v29, %v2168_v26 }
0x151d   :  { %v2278_v57 = vadd.f32 %v2276_v30, %v2268_v28 }
0x151e   :  { %3418 = vtanh.f32 %v2178_v58  ;;  %v2186_v38 = vsel %vm1918_vm4, %v2178_v58, %v1912_v25  ;;  %v2727_v25 = vld [vmem:[%s4542_s14 + $0x30] sm:$0xff]  ;;  %v2725_v58 = vld [vmem:[%s4542_s14 + $0x20] sm:$0xff] }
0x151f   :  { %3420 = vtanh.f32 %v2278_v57  ;;  %v2724_v57 = vld [vmem:[%s4542_s14 + $0x18] sm:$0xff] }
0x1528   :  { %v2191_v43 = vpop.permute.xlu1 %2190 }
0x1529   :  { %vm2192_vm6 = vcmp.eq.s32.totalorder %v2191_v43, 1  ;;  %v2721_v43 = vld [vmem:[%s4542_s14] sm:$0xff] }
0x152b   :  { %v3419_v12 = vpop.eup %3418 }
0x152c   :  { %v3421_v18 = vpop.eup %3420  ;;  %2181 = vrot.lane.b32.xlu0 %v3419_v12, %s3536_s26  ;;  %v2723_v12 = vld [vmem:[%s4542_s14 + $0x10] sm:$0xff] }
0x152d   :  { %2281 = vrot.lane.b32.xlu1 %v3421_v18, %s3536_s26  ;;  %v2722_v18 = vld [vmem:[%s4542_s14 + $0x8] sm:$0xff]  ;;  %s3538_s14 = smov [#allocation8]  }
0x152e   :  { %s2823_s10 = sshll.u32 %s3538_s14, 4  ;;  %s2824_s10 = int_to_ptr.vmem [resolvable:$true] %s2823_s10 }
0x152f   :  { %p3506_p2 = scmp.lt.s32.totalorder %s2824_s10, %s2824_s10 }
0x159e   :  { %v2182_v31 = vpop.permute.xlu0 %2181 }
0x159f   :  { %v2282_v59 = vpop.permute.xlu1 %2281  ;;  %v2184_v36 = vmul.f32 %v2182_v31, %v2167_v3  ;;  %v2869_v31 = vld [vmem:[%s4541_s13] ss:$0 sm:$0xff]  ;;  %s3501_s13 = scalar_lea.vmem %s2824_s10, 256 }
0x15a0   :  { %v2284_v41 = vmul.f32 %v2282_v59, %v2267_v9  ;;  %p3502_p1 = scmp.ne.s32.totalorder %s2824_s10, %s3501_s13  ;;  %p3507_p3 = scmp.lt.s32.totalorder %s3501_s13, %s3501_s13 }
0x15a1   :  { %v2185_v33 = vsel %vm1918_vm4, %v2184_v36, %v4343_v54 }
0x15a2   :  { %v2285_v47 = vsel %vm2192_vm6, %v2284_v41, %v4353_v34  ;;  %2287 = vrot.lane.b32.xlu0 %v2185_v33, %s3537_s27  ;;  %p3508_p4 = por %p3507_p3, %p3506_p2 }
0x15a3   :  { %2362 = vrot.lane.b32.xlu1 %v2285_v47, %s3537_s27  ;;  %v2732_v47 = vshrl.u32 %v96_v14, 7 }
0x15a4   :  { %p3509_p5 = pnand %p3508_p4, %p3502_p1 }
0x1614   :  { %v2288_v13 = vpop.permute.xlu0 %2287 }
0x1615   :  { %v2363_v60 = vpop.permute.xlu1 %2362  ;;  %3294 = vmatmul.mubr.msk.f32.vlgmr.msra.gmra.mxu0 %vm141_vm1, %v2288_v13  ;;  %v2733_v13 = vsub.s32 0, %v2732_v47 }
0x1616   :  { %3305 = vmatmul.mubr.msk.f32.vlgmr.msra.gmra.mxu1 %vm141_vm1, %v2363_v60  ;;  %3315 = vmatprep.mubr.msk.f32.mxu0 %vm3533_vm0, %v3532_v0  ;;  %v2729_v60 = vld [vmem:[%s4543_s15] sm:$0x3] }
0x1617   :  { %3326 = vmatprep.mubr.msk.f32.mxu1 %vm3533_vm0, %v3532_v0  ;;  %3308 = vmatpush3.msra.mxu0 %v2462_v16 }
0x1618   :  { %3309 = vmatprep.subr.mxu0 %v3532_v0  ;;  %3319 = vmatpush3.msra.mxu1 %v2549_v32 }
0x1619   :  { %3310 = vmatpush3.msra.mxu0 %v2461_v50  ;;  %3320 = vmatprep.subr.mxu1 %v3532_v0 }
0x161a   :  { %3311 = vmatprep.subr.mxu0 %v3532_v0  ;;  %3321 = vmatpush3.msra.mxu1 %v2548_v42 }
0x161b   :  { %3322 = vmatprep.subr.mxu1 %v3532_v0 }
0x161c   :  { %3323 = vmatpush3.msra.mxu1 %v2547_v44 }
0x161d   :  { %3324 = vmatprep.subr.mxu1 %v3532_v0 }
0x161e   :  { %3325 = vmatpush3.msra.mxu1 %v2546_v20 }
0x161f   :  { %2768 = vmatprep.subr.mxu1 %v2728_v24 }
0x16d5   :  { %v2357_v48 = vpop.f32.mrf.mxu0 }
0x16d6   :  { %v2432_v11 = vpop.f32.mrf.mxu1 }
0x16d7   :  { %v2433_v54 = vadd.f32 %v2432_v11, %v2357_v48  ;;  %v3295_v5 = vpop.f32.mrf.mxu0  ;;  %v2737_v48 = vsub.s32 1, %v2732_v47  ;;  %v2734_v11 = vrot.slane %v2729_v60, %v2733_v13 }
0x16d8   :  { %v3306_v6 = vpop.f32.mrf.mxu1 }
0x16d9   :  { %v2436_v34 = vadd.f32 %v3440_v39, %v2433_v54  ;;  %v2738_v54 = vrot.slane %v2729_v60, %v2737_v48 }
0x16db   :  { %v2437_v2 = vmul.f32 %v2436_v34, %v3706_v23 }
0x16dd   :  { %3422 = vtanh.f32 %v2437_v2 }
0x16ea   :  { %v3423_v51 = vpop.eup %3422 }
0x16eb   :  { %v2439_v53 = vmul.f32 %v3423_v51, %v3706_v23  ;;  %v2460_v23 = vld [vmem:[#allocation5 + $0x8] sm:$0xff] }
0x16ec   :  { %3312 = vmatpush3.msra.mxu0 %v2460_v23 }
0x16ed   :  { %v2440_v52 = vadd.f32 %v2439_v53, %v3709_v27  ;;  %v2459_v27 = vld [vmem:[#allocation5] sm:$0xff]  ;;  %3313 = vmatprep.subr.mxu0 %v3532_v0 }
0x16ee   :  { %3314 = vmatpush3.msra.mxu0 %v2459_v27 }
0x16ef   :  { %2443 = vrot.lane.b32.xlu0 %v2440_v52, %s3536_s26  ;;  %v2441_v55 = vmul.f32 %v2440_v52, %v2186_v38  ;;  %3329 = vmatprep.subr.mxu0 %v3532_v0 }
0x1761   :  { %v2444_v56 = vpop.permute.xlu0 %2443 }
0x1762   :  { %v2446_v63 = vmul.f32 %v2444_v56, %v2440_v52 }
0x1764   :  { %2448 = vrot.lane.b32.xlu1 %v2446_v63, %s3537_s27 }
0x17d6   :  { %v2449_v8 = vpop.permute.xlu1 %2448 }
0x17d7   :  { %v2451_v19 = vadd.f32 %v2449_v8, %v2441_v55 }
0x17d9   :  { %3424 = vtanh.f32 %v2451_v19 }
0x17e6   :  { %v3425_v46 = vpop.eup %3424 }
0x17e7   :  { %2454 = vrot.lane.b32.xlu0 %v3425_v46, %s3536_s26 }
0x1859   :  { %v2455_v10 = vpop.permute.xlu0 %2454 }
0x185a   :  { %v2457_v37 = vmul.f32 %v2455_v10, %v2440_v52 }
0x185c   :  { %v2458_v35 = vsel %vm2192_vm6, %v2457_v37, %v2185_v33 }
0x185d   :  { %2471 = vrot.lane.b32.xlu1 %v2458_v35, %s3537_s27 }
0x18cf   :  { %v2472_v39 = vpop.permute.xlu1 %2471 }
0x18d0   :  { %3316 = vmatmul.mubr.msk.f32.vlgmr.msra.gmra.mxu0 %vm141_vm1, %v2472_v39 }
0x18d1   :  { %3345 = vmatprep.mubr.msk.f32.mxu0 %vm3533_vm0, %v3532_v0  ;;  %3330 = vmatpush3.msra.mxu0 %v2638_v40  ;;  %vm2646_vm0 = vcmask 523264  }
0x18d2   :  { %3331 = vmatprep.subr.mxu0 %v3532_v0 }
0x18d3   :  { %3332 = vmatpush3.msra.mxu0 %v2637_v15 }
0x18d4   :  { %3333 = vmatprep.subr.mxu0 %v3532_v0 }
0x18d5   :  { %3334 = vmatpush3.msra.mxu0 %v2636_v45 }
0x18d6   :  { %3335 = vmatprep.subr.mxu0 %v3532_v0 }
0x18d7   :  { %3336 = vmatpush3.msra.mxu0 %v2635_v49 }
0x18d8   :  { %3337 = vmatprep.subr.mxu0 %v3532_v0 }
0x18d9   :  { %3338 = vmatpush3.msra.mxu0 %v2634_v4 }
0x18da   :  { %3339 = vmatprep.subr.mxu0 %v3532_v0 }
0x18db   :  { %3340 = vmatpush3.msra.mxu0 %v2633_v1 }
0x18dc   :  { %3341 = vmatprep.subr.mxu0 %v3532_v0 }
0x18dd   :  { %3342 = vmatpush3.msra.mxu0 %v2632_v21 }
0x18de   :  { %3343 = vmatprep.subr.mxu0 %v3532_v0 }
0x18df   :  { %3344 = vmatpush3.msra.mxu0 %v2631_v22 }
0x1990   :  { %v2541_v61 = vpop.f32.mrf.mxu0 }
0x1991   :  { %v2542_v3 = vadd.f32 %v2865_v7, %v2541_v61 }
0x1992   :  { %v3317_v9 = vpop.f32.mrf.mxu0 }
0x1993   :  { %v2545_v17 = vmax.f32 %v2542_v3, 0.0 }
0x1995   :  { %3327 = vmatmul.mubr.msk.f32.vlgmr.msra.gmra.mxu1 %vm141_vm1, %v2545_v17 }
0x1996   :  { %2808 = vmatprep.mubr.f32.mxu1 %v3532_v0  ;;  %2769 = vmatpush1.msra.mxu1 %v2727_v25  ;;  %v2867_v0 = vld [vmem:[%s4539_s11] ss:$0 sm:$0xff] }
0x1997   :  { %2770 = vmatprep.subr.mxu1 %v2726_v62 }
0x1998   :  { %2771 = vmatpush1.msra.mxu1 %v2725_v58 }
0x1999   :  { %2772 = vmatprep.subr.mxu1 %v2724_v57 }
0x199a   :  { %2773 = vmatpush1.msra.mxu1 %v2723_v12 }
0x199b   :  { %2774 = vmatprep.subr.mxu1 %v2722_v18 }
0x199c   :  { %2775 = vmatpush1.msra.mxu1 %v2721_v43 }
0x1a55   :  { %v2626_v26 = vpop.f32.mrf.mxu1 }
0x1a56   :  { %v2627_v28 = vadd.f32 %v2867_v0, %v2626_v26 }
0x1a57   :  { %v3328_v29 = vpop.f32.mrf.mxu1 }
0x1a58   :  { %v2630_v30 = vmax.f32 %v2627_v28, 0.0 }
0x1a5a   :  { %3346 = vmatmul.mubr.msk.f32.vlgmr.msra.gmra.mxu0 %vm2646_vm0, %v2630_v30 }
0x1b1a   :  { %v2716_v59 = vpop.f32.mrf.mxu0 }
0x1b1b   :  { %v2717_v36 = vadd.f32 %v2869_v31, %v2716_v59 }
0x1b1c   :  { %v3347_v41 = vpop.f32.mrf.mxu0 }
0x1b1d   :  { %v2720_v33 = vmax.f32 %v2717_v36, 0.0 }
0x1b1f   :  { %2871 = vmatmul.mubr.msk.f32.vlgmr.msra.gmra.mxu1 %vm141_vm1, %v2720_v33 }
0x1bdf   :  { %v2810_v5 = vpop.f32.mrf.mxu1 }
0x1be0   :  { %v2811_v6 = vadd.f32 %v2810_v5, %v2734_v11 }
0x1be1   :  { %v2812_v34 = vpop.f32.mrf.mxu1 }
0x1be2   :  { %2815 = vst [vmem:[#allocation8] sm:$0xff] %v2811_v6  ;;  %v2813_v2 = vadd.f32 %v2812_v34, %v2738_v54 }
0x1be4   :  { %2816 = vst [vmem:[#allocation8 + $0x8] sm:$0xff] %v2813_v2 }
0x1be5   :  { %3512 = shalt.err (!%p3509_p5)
}
0x1be6   :  { %2826 = dma.vmem_to_hbm [thread:$0]  %s2824_s10, 256, %s4544_s16, [#allocation4]  }
0x1be7   :  { %3525 = dma.done.wait [#allocation4], 256  }
0x1be8   :  { %3526 = vsyncadd [#allocation4], 4294967040 }
0x1be9   :  { %2830 = vsyncpa [#allocation3], 1 }
0x1bea   :  { %2831 = vsyncpa [#allocation6], 1 }
0x1beb   :  { %2832 = vsyncpa [#allocation4], 1 }

</bundles_post_ra>
